<compile_context>
chip_gen: v7x
topology: tpu7x:2x2x1
jax: 0.10.0
libtpu: 0.0.40
codegen_flags: <defaults>
</compile_context>

<pallas_src>
import functools

import jax
import jax.numpy as jnp
import numpy as np
from jax.experimental import pallas as pl
from jax.experimental.pallas import tpu as pltpu

LANE = 128      # vreg lane width
SUBLANE = 8     # f32 sublane tile


def _round_up(x, m):
    return (x + m - 1) // m * m


def _im2col(x_nchw):
    """NCHW -> (B, H*W, 3*3*C) im2col patches (3x3, pad=1, stride=1), f32."""
    B, C, H, W = x_nchw.shape
    K = 3
    x = jnp.transpose(x_nchw, (0, 2, 3, 1))                    # (B, H, W, C)
    xp = jnp.pad(x, ((0, 0), (1, 1), (1, 1), (0, 0)))
    cols = [xp[:, i:i + H, j:j + W, :] for i in range(K) for j in range(K)]
    patches = jnp.concatenate(cols, axis=-1)                   # (B, H, W, KKC)
    return patches.reshape(B, H * W, K * K * C).astype(jnp.float32)


def _pick_spatial_tile(hw, b_tile, target_rows=1024):
    """Largest spatial tile (multiple of 8, dividing hw) giving ~target rows/step."""
    t = min(hw, max(SUBLANE, target_rows // b_tile))
    t = max(SUBLANE, (t // SUBLANE) * SUBLANE)
    while t > SUBLANE and hw % t != 0:
        t -= SUBLANE
    if hw % t != 0:
        t = hw        # fallback: single reduction step, block == full extent
    return t


def _bbox_kernel(b_tile, t_sp, inv_hw,
                 patches_ref, conv_w_ref, conv_b_ref, head_w_ref, head_b_ref,
                 out_ref, acc_ref):
    r = pl.program_id(1)                      # spatial-chunk (reduction) index

    @pl.when(r == 0)
    def _init():
        acc_ref[...] = jnp.zeros_like(acc_ref)

    # "base_model" conv: im2col matmul (bf16 operands, f32 acc) + bias + ReLU.
    h = jnp.dot(patches_ref[...], conv_w_ref[...],
                preferred_element_type=jnp.float32)            # (b_tile*t_sp, F)
    h = jnp.maximum(h + conv_b_ref[...], 0.0)

    # Partial global-average-pool: per-batch row sums of this spatial chunk
    # (static, 128-row-aligned slices -> cheap XLU/VPU filler under the matmul).
    parts = [jnp.sum(h[bi * t_sp:(bi + 1) * t_sp, :], axis=0, keepdims=True)
             for bi in range(b_tile)]
    acc_ref[...] += jnp.concatenate(parts, axis=0)             # (b_tile, F)

    # Last reduction step: finish GAP, apply fused (bbox ++ clf) heads, store
    # one sublane-full, lane-dense (b_tile, pad_out) block.
    @pl.when(r == pl.num_programs(1) - 1)
    def _finalize():
        feat = (acc_ref[...] * inv_hw).astype(jnp.bfloat16)    # (b_tile, F)
        out_ref[...] = (jnp.dot(feat, head_w_ref[...],
                                preferred_element_type=jnp.float32)
                        + head_b_ref[...])


def bbox_predictor_forward(x_nchw, params, n_quantiles, *, b_tile=8):
    """Forward pass matching BBoxPredictor.forward (with_clf=True)."""
    B, C, H, W = x_nchw.shape
    K = 3
    HW = H * W
    KKC = K * K * C
    F = params["conv_w"].shape[1]
    nq = n_quantiles
    n_out = 4 * nq + 1                                # bbox ++ clf columns
    pad_out = _round_up(n_out, LANE)                  # lane-dense fused output
    kkc_pad = _round_up(KKC, LANE)                    # aligned contraction dim
    b_pad = _round_up(B, b_tile)                      # sublane-full batch tiles
    nb = b_pad // b_tile
    t_sp = _pick_spatial_tile(HW, b_tile)
    nr = HW // t_sp

    # --- wrapper glue: im2col, batch/K padding, (nr, nb, rows, K) regrouping ---
    patches = _im2col(x_nchw)                                        # (B, HW, KKC)
    patches = jnp.pad(patches, ((0, b_pad - B), (0, 0), (0, kkc_pad - KKC)))
    patches = patches.reshape(b_pad, nr, t_sp, kkc_pad)
    patches = patches.transpose(1, 0, 2, 3).reshape(nr, nb, b_tile * t_sp, kkc_pad)
    patches = patches.astype(jnp.bfloat16)

    conv_w = jnp.pad(params["conv_w"],
                     ((0, kkc_pad - KKC), (0, 0))).astype(jnp.bfloat16)
    conv_b = params["conv_b"].astype(jnp.float32)                    # (1, F)

    head_w = jnp.concatenate([params["bbox_w"], params["clf_w"]], axis=1)
    head_b = jnp.concatenate([params["bbox_b"], params["clf_b"]], axis=1)
    head_w = jnp.pad(head_w, ((0, 0), (0, pad_out - n_out))).astype(jnp.bfloat16)
    head_b = jnp.pad(head_b, ((0, 0), (0, pad_out - n_out))).astype(jnp.float32)

    cost = pl.CostEstimate(
        flops=2 * b_pad * HW * kkc_pad * F + 2 * b_pad * F * pad_out,
        transcendentals=0,
        bytes_accessed=(patches.size * 2 + conv_w.size * 2 + head_w.size * 2
                        + 4 * (conv_b.size + head_b.size + b_pad * pad_out)))

    wmap = lambda i, r: (0, 0)        # grid-resident weights (no re-DMA across r)
    kernel = functools.partial(_bbox_kernel, b_tile, t_sp, 1.0 / HW)

    out = pl.pallas_call(
        kernel,
        out_shape=jax.ShapeDtypeStruct((b_pad, pad_out), jnp.float32),
        grid_spec=pltpu.PrefetchScalarGridSpec(
            num_scalar_prefetch=0,
            grid=(nb, nr),                         # (parallel, reduction-last)
            in_specs=[
                pl.BlockSpec((None, None, b_tile * t_sp, kkc_pad),
                             lambda i, r: (r, i, 0, 0)),        # patch tiles
                pl.BlockSpec((kkc_pad, F), wmap),               # conv weight
                pl.BlockSpec((1, F), wmap),                     # conv bias
                pl.BlockSpec((F, pad_out), wmap),               # fused head W
                pl.BlockSpec((1, pad_out), wmap),               # fused head b
            ],
            out_specs=pl.BlockSpec((b_tile, pad_out), lambda i, r: (i, 0)),
            scratch_shapes=[pltpu.VMEM((b_tile, F), jnp.float32)],  # GAP acc
        ),
        compiler_params=pltpu.CompilerParams(
            dimension_semantics=("parallel", "arbitrary")),
        cost_estimate=cost,
    )(patches, conv_w, conv_b, head_w, head_b)

    # --- glue: drop batch padding, split fused output exactly like the module ---
    out = out[:B]
    bbox = out[:, :4 * nq]
    clf = out[:, 4 * nq:4 * nq + 1]
    bbox_pred = jnp.squeeze(bbox.reshape(B, 4, nq))   # mimics torch .squeeze()
    return bbox_pred, clf


def make_params(key, c_in, n_features, n_quantiles):
    k = jax.random.split(key, 6)
    K = 3
    conv_w = jax.random.normal(k[0], (K * K * c_in, n_features), jnp.float32) * 0.1
    conv_b = jax.random.normal(k[1], (1, n_features), jnp.float32) * 0.1
    bbox_w = jax.random.normal(k[2], (n_features, 4 * n_quantiles), jnp.float32) * 0.1
    bbox_b = jax.random.normal(k[3], (1, 4 * n_quantiles), jnp.float32) * 0.1
    clf_w = jax.random.normal(k[4], (n_features, 1), jnp.float32) * 0.1
    clf_b = jax.random.normal(k[5], (1, 1), jnp.float32) * 0.1
    return dict(conv_w=conv_w, conv_b=conv_b, bbox_w=bbox_w, bbox_b=bbox_b,
                clf_w=clf_w, clf_b=clf_b)


def reference_forward(x_nchw, params, n_quantiles):
    """Pure-JAX f32 reference (same im2col path) for correctness checking."""
    B = x_nchw.shape[0]
    patches = _im2col(x_nchw)                                    # (B, HW, KKC)
    h = jnp.maximum(
        jnp.einsum("bpk,kf->bpf", patches, params["conv_w"],
                   precision=jax.lax.Precision.HIGHEST)
        + params["conv_b"][None], 0.0)
    feat = jnp.mean(h, axis=1)                                   # (B, F)
    bbox = jnp.dot(feat, params["bbox_w"],
                   precision=jax.lax.Precision.HIGHEST) + params["bbox_b"]
    clf = jnp.dot(feat, params["clf_w"],
                  precision=jax.lax.Precision.HIGHEST) + params["clf_b"]
    return jnp.squeeze(bbox.reshape(B, 4, n_quantiles)), clf


if __name__ == "__main__":
    B, C, H, W = 2, 4, 16, 16
    n_features = 32
    n_quantiles = 1

    key = jax.random.PRNGKey(0)
    kx, kp = jax.random.split(key)
    x = jax.random.normal(kx, (B, C, H, W), jnp.float32)
    params = make_params(kp, C, n_features, n_quantiles)

    bbox_pred, clf_pred = bbox_predictor_forward(x, params, n_quantiles)
    jax.block_until_ready((bbox_pred, clf_pred))

    bbox_ref, clf_ref = reference_forward(x, params, n_quantiles)
    assert bbox_pred.shape == bbox_ref.shape and clf_pred.shape == clf_ref.shape
    # bf16 conv/head operands with f32 accumulation -> loosened tolerance.
    np.testing.assert_allclose(np.asarray(bbox_pred), np.asarray(bbox_ref),
                               rtol=2e-2, atol=2e-2)
    np.testing.assert_allclose(np.asarray(clf_pred), np.asarray(clf_ref),
                               rtol=2e-2, atol=2e-2)

    print("KERNEL_OK")
</pallas_src>

<mosaic_0001>
module attributes {stable_mosaic.version = 11 : i64} {
  func.func @_bbox_kernel(%arg0: i32, %arg1: i32, %arg2: memref<1x1x1024x128xbf16, #tpu.memory_space<vmem>>, %arg3: memref<128x32xbf16, #tpu.memory_space<vmem>>, %arg4: memref<1x32xf32, #tpu.memory_space<vmem>>, %arg5: memref<32x128xbf16, #tpu.memory_space<vmem>>, %arg6: memref<1x128xf32, #tpu.memory_space<vmem>>, %arg7: memref<8x128xf32, #tpu.memory_space<vmem>>, %arg8: memref<8x32xf32, #tpu.memory_space<vmem>>) attributes {dimension_semantics = [#tpu.dimension_semantics<parallel>, #tpu.dimension_semantics<arbitrary>], iteration_bounds = array<i64: 1, 2>, scalar_prefetch = 0 : i64, scratch_operands = 1 : i64, tpu.core_type = #tpu.core_type<tc>, window_params = [{transform_indices = @transform_0, window_bounds = array<i64: 1, 1, 1024, 128>}, {pipeline_mode = #tpu.pipeline_mode<synchronous>, transform_indices = @transform_1, window_bounds = array<i64: 128, 32>}, {pipeline_mode = #tpu.pipeline_mode<synchronous>, transform_indices = @transform_2, window_bounds = array<i64: 1, 32>}, {pipeline_mode = #tpu.pipeline_mode<synchronous>, transform_indices = @transform_3, window_bounds = array<i64: 32, 128>}, {pipeline_mode = #tpu.pipeline_mode<synchronous>, transform_indices = @transform_4, window_bounds = array<i64: 1, 128>}, {transform_indices = @transform_5, window_bounds = array<i64: 8, 128>}]} {
    %c0_i32 = arith.constant 0 : i32
    %0 = arith.cmpi eq, %arg1, %c0_i32 : i32
    %1 = arith.extui %0 : i1 to i32
    %c0_i32_0 = arith.constant 0 : i32
    %2 = arith.cmpi ne, %1, %c0_i32_0 : i32
    scf.if %2 {
      %cst_22 = arith.constant 0.000000e+00 : f32
      %43 = vector.broadcast %cst_22 : f32 to vector<8x32xf32>
      %c0_23 = arith.constant 0 : index
      %c0_24 = arith.constant 0 : index
      %44 = vector.load %arg8[%c0_23, %c0_24] : memref<8x32xf32, #tpu.memory_space<vmem>>, vector<8x32xf32>
      tpu.vector_store %arg8[%c0_23, %c0_24], %43 {strides = array<i32>} : memref<8x32xf32, #tpu.memory_space<vmem>>, vector<8x32xf32>,
    } else {
    }
    %c0 = arith.constant 0 : index
    %c0_1 = arith.constant 0 : index
    %c0_2 = arith.constant 0 : index
    %c0_3 = arith.constant 0 : index
    %3 = vector.load %arg2[%c0, %c0_1, %c0_2, %c0_3] : memref<1x1x1024x128xbf16, #tpu.memory_space<vmem>>, vector<1x1x1024x128xbf16>
    %4 = vector.shape_cast %3 : vector<1x1x1024x128xbf16> to vector<1024x128xbf16>
    %c0_4 = arith.constant 0 : index
    %c0_5 = arith.constant 0 : index
    %5 = vector.load %arg3[%c0_4, %c0_5] : memref<128x32xbf16, #tpu.memory_space<vmem>>, vector<128x32xbf16>
    %cst = arith.constant dense<0.000000e+00> : vector<1024x32xf32>
    %6 = tpu.matmul %4, %5, %cst {dimension_numbers = #tpu.dot_dimension_numbers<[1], [0], [0], [1], [0, 0, 1, 1], [], []>} : vector<1024x128xbf16>, vector<128x32xbf16>, vector<1024x32xf32> -> vector<1024x32xf32>
    %c0_6 = arith.constant 0 : index
    %c0_7 = arith.constant 0 : index
    %7 = vector.load %arg4[%c0_6, %c0_7] : memref<1x32xf32, #tpu.memory_space<vmem>>, vector<1x32xf32>
    %8 = vector.broadcast %7 : vector<1x32xf32> to vector<1024x32xf32>
    %9 = arith.addf %6, %8 : vector<1024x32xf32>
    %cst_8 = arith.constant 0.000000e+00 : f32
    %10 = vector.broadcast %cst_8 : f32 to vector<1024x32xf32>
    %11 = arith.maximumf %9, %10 : vector<1024x32xf32>
    %12 = vector.extract_strided_slice %11 {offsets = [0, 0], sizes = [128, 32], strides = [1, 1]} : vector<1024x32xf32> to vector<128x32xf32>
    %cst_9 = arith.constant dense<0.000000e+00> : vector<32xf32>
    %13 = vector.multi_reduction <add>, %12, %cst_9 [0] : vector<128x32xf32> to vector<32xf32>
    %14 = vector.shape_cast %13 : vector<32xf32> to vector<1x32xf32>
    %15 = vector.extract_strided_slice %11 {offsets = [128, 0], sizes = [128, 32], strides = [1, 1]} : vector<1024x32xf32> to vector<128x32xf32>
    %cst_10 = arith.constant dense<0.000000e+00> : vector<32xf32>
    %16 = vector.multi_reduction <add>, %15, %cst_10 [0] : vector<128x32xf32> to vector<32xf32>
    %17 = vector.shape_cast %16 : vector<32xf32> to vector<1x32xf32>
    %18 = vector.extract_strided_slice %11 {offsets = [256, 0], sizes = [128, 32], strides = [1, 1]} : vector<1024x32xf32> to vector<128x32xf32>
    %cst_11 = arith.constant dense<0.000000e+00> : vector<32xf32>
    %19 = vector.multi_reduction <add>, %18, %cst_11 [0] : vector<128x32xf32> to vector<32xf32>
    %20 = vector.shape_cast %19 : vector<32xf32> to vector<1x32xf32>
    %21 = vector.extract_strided_slice %11 {offsets = [384, 0], sizes = [128, 32], strides = [1, 1]} : vector<1024x32xf32> to vector<128x32xf32>
    %cst_12 = arith.constant dense<0.000000e+00> : vector<32xf32>
    %22 = vector.multi_reduction <add>, %21, %cst_12 [0] : vector<128x32xf32> to vector<32xf32>
    %23 = vector.shape_cast %22 : vector<32xf32> to vector<1x32xf32>
    %24 = vector.extract_strided_slice %11 {offsets = [512, 0], sizes = [128, 32], strides = [1, 1]} : vector<1024x32xf32> to vector<128x32xf32>
    %cst_13 = arith.constant dense<0.000000e+00> : vector<32xf32>
    %25 = vector.multi_reduction <add>, %24, %cst_13 [0] : vector<128x32xf32> to vector<32xf32>
    %26 = vector.shape_cast %25 : vector<32xf32> to vector<1x32xf32>
    %27 = vector.extract_strided_slice %11 {offsets = [640, 0], sizes = [128, 32], strides = [1, 1]} : vector<1024x32xf32> to vector<128x32xf32>
    %cst_14 = arith.constant dense<0.000000e+00> : vector<32xf32>
    %28 = vector.multi_reduction <add>, %27, %cst_14 [0] : vector<128x32xf32> to vector<32xf32>
    %29 = vector.shape_cast %28 : vector<32xf32> to vector<1x32xf32>
    %30 = vector.extract_strided_slice %11 {offsets = [768, 0], sizes = [128, 32], strides = [1, 1]} : vector<1024x32xf32> to vector<128x32xf32>
    %cst_15 = arith.constant dense<0.000000e+00> : vector<32xf32>
    %31 = vector.multi_reduction <add>, %30, %cst_15 [0] : vector<128x32xf32> to vector<32xf32>
    %32 = vector.shape_cast %31 : vector<32xf32> to vector<1x32xf32>
    %33 = vector.extract_strided_slice %11 {offsets = [896, 0], sizes = [128, 32], strides = [1, 1]} : vector<1024x32xf32> to vector<128x32xf32>
    %cst_16 = arith.constant dense<0.000000e+00> : vector<32xf32>
    %34 = vector.multi_reduction <add>, %33, %cst_16 [0] : vector<128x32xf32> to vector<32xf32>
    %35 = vector.shape_cast %34 : vector<32xf32> to vector<1x32xf32>
    %c0_17 = arith.constant 0 : index
    %c0_18 = arith.constant 0 : index
    %36 = vector.load %arg8[%c0_17, %c0_18] : memref<8x32xf32, #tpu.memory_space<vmem>>, vector<8x32xf32>
    %37 = tpu.concatenate %14, %17, %20, %23, %26, %29, %32, %35 in 0 : vector<1x32xf32>, vector<1x32xf32>, vector<1x32xf32>, vector<1x32xf32>, vector<1x32xf32>, vector<1x32xf32>, vector<1x32xf32>, vector<1x32xf32> -> vector<8x32xf32>
    %38 = arith.addf %36, %37 : vector<8x32xf32>
    %c0_19 = arith.constant 0 : index
    %c0_20 = arith.constant 0 : index
    %39 = vector.load %arg8[%c0_19, %c0_20] : memref<8x32xf32, #tpu.memory_space<vmem>>, vector<8x32xf32>
    tpu.vector_store %arg8[%c0_19, %c0_20], %38 {strides = array<i32>} : memref<8x32xf32, #tpu.memory_space<vmem>>, vector<8x32xf32>,
    %c1_i32 = arith.constant 1 : i32
    %40 = arith.cmpi eq, %arg1, %c1_i32 : i32
    %41 = arith.extui %40 : i1 to i32
    %c0_i32_21 = arith.constant 0 : i32
    %42 = arith.cmpi ne, %41, %c0_i32_21 : i32
    scf.if %42 {
      %c0_22 = arith.constant 0 : index
      %c0_23 = arith.constant 0 : index
      %43 = vector.load %arg8[%c0_22, %c0_23] : memref<8x32xf32, #tpu.memory_space<vmem>>, vector<8x32xf32>
      %cst_24 = arith.constant 3.906250e-03 : f32
      %44 = vector.broadcast %cst_24 : f32 to vector<8x32xf32>
      %45 = arith.mulf %43, %44 : vector<8x32xf32>
      %46 = arith.truncf %45 : vector<8x32xf32> to vector<8x32xbf16>
      %c0_25 = arith.constant 0 : index
      %c0_26 = arith.constant 0 : index
      %47 = vector.load %arg5[%c0_25, %c0_26] : memref<32x128xbf16, #tpu.memory_space<vmem>>, vector<32x128xbf16>
      %cst_27 = arith.constant dense<0.000000e+00> : vector<8x128xf32>
      %48 = tpu.matmul %46, %47, %cst_27 {dimension_numbers = #tpu.dot_dimension_numbers<[1], [0], [0], [1], [0, 0, 1, 1], [], []>} : vector<8x32xbf16>, vector<32x128xbf16>, vector<8x128xf32> -> vector<8x128xf32>
      %c0_28 = arith.constant 0 : index
      %c0_29 = arith.constant 0 : index
      %49 = vector.load %arg6[%c0_28, %c0_29] : memref<1x128xf32, #tpu.memory_space<vmem>>, vector<1x128xf32>
      %50 = vector.broadcast %49 : vector<1x128xf32> to vector<8x128xf32>
      %51 = arith.addf %48, %50 : vector<8x128xf32>
      %c0_30 = arith.constant 0 : index
      %c0_31 = arith.constant 0 : index
      %52 = vector.load %arg7[%c0_30, %c0_31] : memref<8x128xf32, #tpu.memory_space<vmem>>, vector<8x128xf32>
      tpu.vector_store %arg7[%c0_30, %c0_31], %51 {strides = array<i32>} : memref<8x128xf32, #tpu.memory_space<vmem>>, vector<8x128xf32>,
    } else {
    }
    return
  }
  func.func @transform_0(%arg0: i32, %arg1: i32) -> (i32, i32, i32, i32) {
    %c0_i32 = arith.constant 0 : i32
    %c0_i32_0 = arith.constant 0 : i32
    %c0_i32_1 = arith.constant 0 : i32
    return %arg1, %arg0, %c0_i32, %c0_i32_0 : i32, i32, i32, i32
  }
  func.func @transform_1(%arg0: i32, %arg1: i32) -> (i32, i32) {
    %c0_i32 = arith.constant 0 : i32
    %c0_i32_0 = arith.constant 0 : i32
    %c0_i32_1 = arith.constant 0 : i32
    return %c0_i32, %c0_i32_0 : i32, i32
  }
  func.func @transform_2(%arg0: i32, %arg1: i32) -> (i32, i32) {
    %c0_i32 = arith.constant 0 : i32
    %c0_i32_0 = arith.constant 0 : i32
    %c0_i32_1 = arith.constant 0 : i32
    return %c0_i32, %c0_i32_0 : i32, i32
  }
  func.func @transform_3(%arg0: i32, %arg1: i32) -> (i32, i32) {
    %c0_i32 = arith.constant 0 : i32
    %c0_i32_0 = arith.constant 0 : i32
    %c0_i32_1 = arith.constant 0 : i32
    return %c0_i32, %c0_i32_0 : i32, i32
  }
  func.func @transform_4(%arg0: i32, %arg1: i32) -> (i32, i32) {
    %c0_i32 = arith.constant 0 : i32
    %c0_i32_0 = arith.constant 0 : i32
    %c0_i32_1 = arith.constant 0 : i32
    return %c0_i32, %c0_i32_0 : i32, i32
  }
  func.func @transform_5(%arg0: i32, %arg1: i32) -> (i32, i32) {
    %c0_i32 = arith.constant 0 : i32
    %c0_i32_0 = arith.constant 0 : i32
    return %arg0, %c0_i32 : i32, i32
  }
}

</mosaic_0001>

<bundles_post_ra>
// kernel: tpu_custom_call.1
= control target key start
LH: loop header
LB: loop body
LE: loop exit
PB: predicated region body
PF: predicated region fallthrough
CT: control target
= control target key end

     0   :  { %10 = vsyncpa [#allocation4], 0  ;;  %s3146_s0 = inlined_call_operand.hbm [shape: bf16[2,1,1024,128], index: 0, kind: input, shape index: {}]   ;;  %s3147_s1 = inlined_call_operand.vmem [shape: bf16[128,32], index: 1, kind: input, shape index: {}]   ;;  %s3148_s2 = inlined_call_operand.vmem [shape: f32[1,32], index: 2, kind: input, shape index: {}]   ;;  %s3149_s3 = inlined_call_operand.vmem [shape: bf16[32,128], index: 3, kind: input, shape index: {}]   ;;  %s3150_s4 = inlined_call_operand.vmem [shape: f32[1,128], index: 4, kind: input, shape index: {}]   ;;  %s3151_s5 = inlined_call_operand.hbm [shape: f32[8,128], index: 5, kind: output, shape index: {}]  }
   0x1   :  { %12 = vsyncpa [#allocation4 + $0x1], 0 }
   0x2   :  { %13 = vsyncpa [#allocation5], 0  ;;  %s2602_s18 = smov 0   ;;  %s2604_s19 = smov 0  }
   0x3   :  { %s2606_s20 = smov 0   ;;  %s2608_s21 = smov 0  }
   0x4   :  { %s2610_s22 = smov 0   ;;  %s2612_s23 = smov 0  }
   0x5 LB: > { %s1976_s24 = sadd.s32 4294967295, %s2563_s23   ;;  %s28_s25 = sadd.s32 1, %s2559_s22  ;;  %s2563_s23 = sphi %s2612_s23, %s19_s23   ;;  %s2559_s22 = sphi %s2610_s22, %s3160_s22   ;;  %s2555_s21 = sphi %s2608_s21, %s3159_s21   ;;  %s2551_s20 = sphi %s2606_s20, %s3158_s20   ;;  %s2547_s19 = sphi %s2604_s19, %s3157_s19   ;;  %s2543_s18 = sphi %s2602_s18, %s3156_s18  }
   0x6   : > { %p29_p0 = scmp.ge.s32.totalorder %s28_s25, 2  ;;  %s40_s26 = sadd.s32 1, %s2551_s20 }
   0x7   : > { %p47_p1 = scmp.ne.s32.totalorder %s2551_s20, %s2547_s19  ;;  %p48_p2 = scmp.eq.s32.totalorder %s2563_s23, 0 }
   0x8   : > { %s3162_s25 = smov (%p29_p0, %s28_s25), 0  ;;  %p53_p4 = scmp.ne.s32.totalorder %s2547_s19, %s2543_s18 }
   0x9   : > { %p2638_p3 = por %p48_p2, %p47_p1  ;;  %s35_s28 = ssub.s32 %s2559_s22, %s3162_s25 }
   0xa   : > { %p54_p5 = scmp.eq.s32.totalorder %s1976_s24, 0  ;;  %p38_p6 = scmp.eq.s32.totalorder %s35_s28, 0 }
   0xb   : > { %p2321_p8 = scmp.lt.s32.totalorder %s2563_s23, 2  ;;  %s199_s6 = sand.u32 1, %s2551_s20  }
   0xc   : > { %p2647_p7 = por %p54_p5, %p53_p4  ;;  %s2067_s7 = sshll.u32 %s2559_s22, 13 }
   0xd   : > { %s2653_s30 = scalar_select %p38_p6, %s2551_s20, %s40_s26  }
   0xe   : > { %s1979_s8 = sshll.u32 %s199_s6, 9  ;;  %s2660_s11 = scalar_lea.hbm %s3146_s0, %s2067_s7 }
   0xf   : > { %s203_s12 = scalar_lea.vmem [#allocation3], %s1979_s8  ;;  %p2664_p9 = pnand %p2321_p8, %p2638_p3 }
  0x10   : > { %s212_s13 = sshll.u32 %s203_s12, 4  ;;  %s2670_s15 = scalar_lea.sflag [#allocation4], %s199_s6  ;;  %s2668_s13 = int_to_ptr.vmem [resolvable:$true] %s212_s13 }
  0x11   : > { %s2453_s16 = scalar_lea.hbm %s2660_s11, 8192  ;;  %p2455_p11 = pneg %p2664_p9 }
  0x12   : > { %p2454_p10 = scmp.ne.s32.totalorder %s2660_s11, %s2453_s16  ;;  %s2458_s26 = scalar_lea.hbm %s3146_s0, 16384 }
  0x13   : > { %p2459_p0 = scmp.lt.u32.totalorder %s2660_s11, %s3146_s0  ;;  %p2460_p1 = scmp.lt.u32.totalorder %s2458_s26, %s2453_s16 }
  0x14   : > { %p2456_p12 = pnand %p2455_p11, %p2454_p10  ;;  %p2462_p3 = scmp.lt.u32.totalorder %s2453_s16, %s2660_s11 }
  0x15   : > { %p2461_p2 = por %p2460_p1, %p2459_p0 }
  0x16   : > { %p2457_p13 = pneg %p2456_p12 }
  0x17   : > { %p2463_p4 = por %p2462_p3, %p2461_p2 }
  0x19   : > { %p2464_p5 = pnand %p2463_p4, %p2457_p13 }
  0x1b   : > { %2467 = shalt.err (!%p2464_p5)
}
  0x1c   : > { %s2468_s6 = scalar_lea.vmem %s2668_s13, 8192  ;;  %s2565_s7 = smov [#allocation3]  }
  0x1d   : > { %p2469_p6 = scmp.ne.s32.totalorder %s2668_s13, %s2468_s6  ;;  %s2473_s8 = sshll.u32 %s2565_s7, 4  ;;  %s2474_s8 = int_to_ptr.vmem [resolvable:$false] %s2473_s8 }
  0x1e   : > { %s2475_s9 = scalar_lea.vmem %s2474_s8, 16384  ;;  %p2476_p12 = scmp.lt.s32.totalorder %s2668_s13, %s2474_s8 }
  0x1f   : > { %p2471_p8 = pnand %p2469_p6, %p2455_p11  ;;  %p2477_p0 = scmp.lt.s32.totalorder %s2475_s9, %s2468_s6 }
  0x21   : > { %p2472_p10 = pneg %p2471_p8  ;;  %p2478_p1 = por %p2477_p0, %p2476_p12 }
  0x23   : > { %p2479_p2 = pnand %p2478_p1, %p2472_p10 }
  0x25   : > { %2482 = shalt.err (!%p2479_p2)
}
  0x26   : > { %s2566_s10 = smov 64   ;;  %s2567_s12 = smov 4  }
  0x27   : > { %2320 = dma.hbm_to_vmem [thread:$0]  (!%p2664_p9), %s2660_s11, 8192, %s2668_s13, %s2670_s15, %s2566_s10, %s2566_s10, %s2567_s12  }
  0x28   : > { %p1982_p11 = scmp.ge.s32.totalorder %s2563_s23, 1  ;;  %p220_p13 = scmp.lt.s32.totalorder %s2563_s23, 3 }
  0x2a   : > { %p221_p3 = pnand %p1982_p11, %p220_p13 }
  0x2b   : > { %s226_s16 = sand.u32 (!%p221_p3), 1, %s2547_s19  }
  0x2c   : > { %224 = sbr.rel (%p221_p3) target bundleno = 716 (0x2cc), region = 40  ;;  %s1983_s17 = sshll.u32 (!%p221_p3), %s226_s16, 9 }
  0x2d   : > { %s227_s18 = scalar_lea.sflag (!%p221_p3), [#allocation4], %s226_s16  ;;  %s2701_s26 = scalar_lea.vmem (!%p221_p3), [#allocation3], %s1983_s17 }
  0x33   : > { %2534 = dma.done.wait (%p2647_p7), %s227_s18, 8192  }
  0x34   : > { %2536 = vsyncadd (%p2647_p7), %s227_s18, 4294959104  ;;  %p1984_p4 = scmp.ne.s32.totalorder %s2555_s21, 0 }
  0x35   : > { %vm257_vm0 = vcmask (!%p1984_p4), 261120   ;;  %v2568_v0 = vmov (!%p1984_p4), 0.0  }
  0x36   : > { %256 = sbr.rel (%p1984_p4) target bundleno = 61 (0x3d), region = 48  ;;  %258 = vst.msk [vmem:[#allocation2] sm:$0xff] (!%p1984_p4), %vm257_vm0, %v2568_v0 }
  0x3d PF: > { %v2378_v1 = vld [vmem:[%s3147_s1] sm:$0xff]   ;;  %v2379_v2 = vld [vmem:[%s3147_s1 + $0x8] sm:$0xff]   ;;  %v2380_v3 = vld [vmem:[%s3147_s1 + $0x10] sm:$0xff]   ;;  %vm1515_vm1 = vcmask 261120   ;;  %vm1813_vm2 = vcmask 1040384   ;;  %vm1815_vm3 = vcmask 1041408  }
  0x3e   : > { %2143 = vmatprep.subr.bf16.mxu0 %v2378_v1  ;;  %2295 = vmatprep.subr.bf16.mxu1 %v2378_v1  ;;  %v2381_v4 = vld [vmem:[%s3147_s1 + $0x18] sm:$0xff]   ;;  %v2386_v5 = vld [vmem:[%s2701_s26] sm:$0xff]   ;;  %v2382_v7 = vld [vmem:[%s3147_s1 + $0x20] sm:$0xff]   ;;  %vm1817_vm4 = vcmask 1042432   ;;  %vm1819_vm5 = vcmask 1043456   ;;  %vm1821_vm6 = vcmask 1044480  }
  0x3f   : > { %2144 = vmatpush3.bf16.msra.mxu0 %v2378_v1  ;;  %2303 = vmatpush3.bf16.msra.mxu1 %v2378_v1  ;;  %v2387_v6 = vld [vmem:[%s2701_s26 + $0x100] sm:$0xff]   ;;  %v2384_v9 = vld [vmem:[%s3147_s1 + $0x30] sm:$0xff]   ;;  %v2385_v10 = vld [vmem:[%s3147_s1 + $0x38] sm:$0xff]   ;;  %vm1823_vm7 = vcmask 1045504   ;;  %vm1825_vm8 = vcmask 1046528   ;;  %p2058_p7 = scmp.ne.s32.totalorder %s2555_s21, 1 }
  0x40   : > { %2145 = vmatprep.subr.bf16.mxu0 %v2379_v2  ;;  %2296 = vmatprep.subr.bf16.mxu1 %v2379_v2  ;;  %v2383_v8 = vld [vmem:[%s3147_s1 + $0x28] sm:$0xff]   ;;  %v2388_v11 = vld [vmem:[%s2701_s26 + $0x8] sm:$0xff]   ;;  %v2390_v13 = vld [vmem:[%s2701_s26 + $0x10] sm:$0xff]   ;;  %vm2570_vm9 = vmmov (!%p2058_p7), 0  }
  0x41   : > { %2159 = vmatprep.mubr.bf16.mxu0 %v2386_v5  ;;  %2223 = vmatprep.mubr.bf16.mxu1 %v2387_v6  ;;  %v2389_v12 = vld [vmem:[%s2701_s26 + $0x108] sm:$0xff]   ;;  %v2391_v14 = vld [vmem:[%s2701_s26 + $0x110] sm:$0xff]   ;;  %v2392_v15 = vld [vmem:[%s2701_s26 + $0x18] sm:$0xff]  }
  0x42   : > { %v2393_v16 = vld [vmem:[%s2701_s26 + $0x118] sm:$0xff]   ;;  %v2394_v17 = vld [vmem:[%s2701_s26 + $0x20] sm:$0xff]   ;;  %v2396_v19 = vld [vmem:[%s2701_s26 + $0x28] sm:$0xff]  }
  0x43   : > { %2146 = vmatpush3.bf16.msra.mxu0 %v2379_v2  ;;  %2304 = vmatpush3.bf16.msra.mxu1 %v2379_v2  ;;  %v2395_v18 = vld [vmem:[%s2701_s26 + $0x120] sm:$0xff]   ;;  %v2397_v20 = vld [vmem:[%s2701_s26 + $0x128] sm:$0xff]   ;;  %v2398_v21 = vld [vmem:[%s2701_s26 + $0x30] sm:$0xff]  }
  0x44   : > { %2147 = vmatprep.subr.bf16.mxu0 %v2380_v3  ;;  %2297 = vmatprep.subr.bf16.mxu1 %v2380_v3  ;;  %v2399_v22 = vld [vmem:[%s2701_s26 + $0x130] sm:$0xff]   ;;  %v2400_v23 = vld [vmem:[%s2701_s26 + $0x38] sm:$0xff]   ;;  %v2402_v25 = vld [vmem:[%s2701_s26 + $0x40] sm:$0xff]  }
  0x45   : > { %v2401_v24 = vld [vmem:[%s2701_s26 + $0x138] sm:$0xff]   ;;  %v2403_v26 = vld [vmem:[%s2701_s26 + $0x140] sm:$0xff]   ;;  %v2404_v27 = vld [vmem:[%s2701_s26 + $0x48] sm:$0xff]  }
  0x46   : > { %v2405_v28 = vld [vmem:[%s2701_s26 + $0x148] sm:$0xff]   ;;  %v2406_v29 = vld [vmem:[%s2701_s26 + $0x50] sm:$0xff]   ;;  %v2408_v31 = vld [vmem:[%s2701_s26 + $0x58] sm:$0xff]  }
  0x47   : > { %2148 = vmatpush3.bf16.msra.mxu0 %v2380_v3  ;;  %2305 = vmatpush3.bf16.msra.mxu1 %v2380_v3  ;;  %v2407_v30 = vld [vmem:[%s2701_s26 + $0x150] sm:$0xff]   ;;  %v2409_v32 = vld [vmem:[%s2701_s26 + $0x158] sm:$0xff]   ;;  %v2410_v33 = vld [vmem:[%s2701_s26 + $0x60] sm:$0xff]  }
  0x48   : > { %2149 = vmatprep.subr.bf16.mxu0 %v2381_v4  ;;  %2298 = vmatprep.subr.bf16.mxu1 %v2381_v4  ;;  %v2411_v34 = vld [vmem:[%s2701_s26 + $0x160] sm:$0xff]   ;;  %v2412_v35 = vld [vmem:[%s2701_s26 + $0x68] sm:$0xff]   ;;  %v2414_v37 = vld [vmem:[%s2701_s26 + $0x70] sm:$0xff]  }
  0x49   : > { %v2413_v36 = vld [vmem:[%s2701_s26 + $0x168] sm:$0xff]   ;;  %v2415_v38 = vld [vmem:[%s2701_s26 + $0x170] sm:$0xff]   ;;  %v2416_v39 = vld [vmem:[%s2701_s26 + $0x78] sm:$0xff]  }
  0x4a   : > { %v2417_v40 = vld [vmem:[%s2701_s26 + $0x178] sm:$0xff]   ;;  %v2418_v41 = vld [vmem:[%s2701_s26 + $0x80] sm:$0xff]   ;;  %v2420_v43 = vld [vmem:[%s2701_s26 + $0x88] sm:$0xff]  }
  0x4b   : > { %2150 = vmatpush3.bf16.msra.mxu0 %v2381_v4  ;;  %2306 = vmatpush3.bf16.msra.mxu1 %v2381_v4  ;;  %v2419_v42 = vld [vmem:[%s2701_s26 + $0x180] sm:$0xff]   ;;  %v2421_v44 = vld [vmem:[%s2701_s26 + $0x188] sm:$0xff]   ;;  %v2422_v45 = vld [vmem:[%s2701_s26 + $0x90] sm:$0xff]  }
  0x4c   : > { %2151 = vmatprep.subr.bf16.mxu0 %v2382_v7  ;;  %2299 = vmatprep.subr.bf16.mxu1 %v2382_v7  ;;  %v2423_v46 = vld [vmem:[%s2701_s26 + $0x190] sm:$0xff]   ;;  %v2424_v47 = vld [vmem:[%s2701_s26 + $0x98] sm:$0xff]   ;;  %v2426_v49 = vld [vmem:[%s2701_s26 + $0xa0] sm:$0xff]  }
  0x4d   : > { %v2425_v48 = vld [vmem:[%s2701_s26 + $0x198] sm:$0xff]   ;;  %v2427_v50 = vld [vmem:[%s2701_s26 + $0x1a0] sm:$0xff]   ;;  %v2428_v51 = vld [vmem:[%s2701_s26 + $0xa8] sm:$0xff]  }
  0x4e   : > { %v2429_v52 = vld [vmem:[%s2701_s26 + $0x1a8] sm:$0xff]   ;;  %v2430_v53 = vld [vmem:[%s2701_s26 + $0xb0] sm:$0xff]   ;;  %v2432_v55 = vld [vmem:[%s2701_s26 + $0xb8] sm:$0xff]  }
  0x4f   : > { %2152 = vmatpush3.bf16.msra.mxu0 %v2382_v7  ;;  %2307 = vmatpush3.bf16.msra.mxu1 %v2382_v7  ;;  %v2431_v54 = vld [vmem:[%s2701_s26 + $0x1b0] sm:$0xff]   ;;  %v2433_v56 = vld [vmem:[%s2701_s26 + $0x1b8] sm:$0xff]   ;;  %v2434_v57 = vld [vmem:[%s2701_s26 + $0xc0] sm:$0xff]  }
  0x50   : > { %2153 = vmatprep.subr.bf16.mxu0 %v2383_v8  ;;  %2300 = vmatprep.subr.bf16.mxu1 %v2383_v8  ;;  %v2435_v58 = vld [vmem:[%s2701_s26 + $0x1c0] sm:$0xff]   ;;  %v2436_v59 = vld [vmem:[%s2701_s26 + $0xc8] sm:$0xff]   ;;  %v2438_v61 = vld [vmem:[%s2701_s26 + $0xd0] sm:$0xff]  }
  0x51   : > { %v2437_v60 = vld [vmem:[%s2701_s26 + $0x1c8] sm:$0xff]   ;;  %v2439_v62 = vld [vmem:[%s2701_s26 + $0x1d0] sm:$0xff]   ;;  %v2440_v63 = vld [vmem:[%s2701_s26 + $0xd8] sm:$0xff]  }
  0x52   : > { %v2441_v0 = vld [vmem:[%s2701_s26 + $0x1d8] sm:$0xff]   ;;  %v2442_v1 = vld [vmem:[%s2701_s26 + $0xe0] sm:$0xff]   ;;  %v2444_v3 = vld [vmem:[%s2701_s26 + $0xe8] sm:$0xff]  }
  0x53   : > { %2154 = vmatpush3.bf16.msra.mxu0 %v2383_v8  ;;  %2308 = vmatpush3.bf16.msra.mxu1 %v2383_v8  ;;  %v2443_v2 = vld [vmem:[%s2701_s26 + $0x1e0] sm:$0xff]   ;;  %v2445_v4 = vld [vmem:[%s2701_s26 + $0x1e8] sm:$0xff]   ;;  %v2446_v5 = vld [vmem:[%s2701_s26 + $0xf0] sm:$0xff]  }
  0x54   : > { %2155 = vmatprep.subr.bf16.mxu0 %v2384_v9  ;;  %2301 = vmatprep.subr.bf16.mxu1 %v2384_v9  ;;  %v2447_v6 = vld [vmem:[%s2701_s26 + $0x1f0] sm:$0xff]   ;;  %v2448_v7 = vld [vmem:[%s2701_s26 + $0xf8] sm:$0xff]  }
  0x55   : > { %v2449_v8 = vld [vmem:[%s2701_s26 + $0x1f8] sm:$0xff]  }
  0x57   : > { %2156 = vmatpush3.bf16.msra.mxu0 %v2384_v9  ;;  %2309 = vmatpush3.bf16.msra.mxu1 %v2384_v9  ;;  %v2799_v9 = vld [vmem:[%s3148_s2] ss:$0 sm:$0xff] }
  0x58   : > { %2157 = vmatprep.subr.bf16.mxu0 %v2385_v10  ;;  %2302 = vmatprep.subr.bf16.mxu1 %v2385_v10 }
  0x5b   : > { %2158 = vmatpush3.bf16.msra.mxu0 %v2385_v10  ;;  %2310 = vmatpush3.bf16.msra.mxu1 %v2385_v10 }
  0x5e   : > { %2160 = vmatmul.mubr.bf16.vlgmr.msra.gmra.mrb[0].mxu0 %v2388_v11  ;;  %2224 = vmatmul.mubr.bf16.vlgmr.msra.gmra.mrb[0].mxu1 %v2389_v12 }
  0x5f   : > { %2163 = vmatprep.mubr.bf16.mxu0 %v2390_v13  ;;  %2227 = vmatprep.mubr.bf16.mxu1 %v2391_v14 }
  0x66   : > { %2164 = vmatmul.mubr.bf16.gmra.mrb[4].mxu0 %v2392_v15  ;;  %2228 = vmatmul.mubr.bf16.gmra.mrb[4].mxu1 %v2393_v16 }
  0x67   : > { %2167 = vmatprep.mubr.bf16.mxu0 %v2394_v17  ;;  %2231 = vmatprep.mubr.bf16.mxu1 %v2395_v18 }
  0x6e   : > { %2168 = vmatmul.mubr.bf16.gmra.mrb[8].mxu0 %v2396_v19  ;;  %2232 = vmatmul.mubr.bf16.gmra.mrb[8].mxu1 %v2397_v20 }
  0x6f   : > { %2171 = vmatprep.mubr.bf16.mxu0 %v2398_v21  ;;  %2235 = vmatprep.mubr.bf16.mxu1 %v2399_v22 }
  0x76   : > { %2172 = vmatmul.mubr.bf16.gmra.mrb[12].mxu0 %v2400_v23  ;;  %2236 = vmatmul.mubr.bf16.gmra.mrb[12].mxu1 %v2401_v24 }
  0x77   : > { %2175 = vmatprep.mubr.bf16.mxu0 %v2402_v25  ;;  %2239 = vmatprep.mubr.bf16.mxu1 %v2403_v26 }
  0x7e   : > { %2176 = vmatmul.mubr.bf16.gmra.mrb[16].mxu0 %v2404_v27  ;;  %2240 = vmatmul.mubr.bf16.gmra.mrb[16].mxu1 %v2405_v28 }
  0x7f   : > { %2179 = vmatprep.mubr.bf16.mxu0 %v2406_v29  ;;  %2243 = vmatprep.mubr.bf16.mxu1 %v2407_v30 }
  0x86   : > { %2180 = vmatmul.mubr.bf16.gmra.mrb[20].mxu0 %v2408_v31  ;;  %2244 = vmatmul.mubr.bf16.gmra.mrb[20].mxu1 %v2409_v32 }
  0x87   : > { %2183 = vmatprep.mubr.bf16.mxu0 %v2410_v33  ;;  %2247 = vmatprep.mubr.bf16.mxu1 %v2411_v34 }
  0x8e   : > { %2184 = vmatmul.mubr.bf16.gmra.mrb[24].mxu0 %v2412_v35  ;;  %2248 = vmatmul.mubr.bf16.gmra.mrb[24].mxu1 %v2413_v36 }
  0x8f   : > { %2187 = vmatprep.mubr.bf16.mxu0 %v2414_v37  ;;  %2251 = vmatprep.mubr.bf16.mxu1 %v2415_v38 }
  0x96   : > { %2188 = vmatmul.mubr.bf16.gmra.mrb[28].mxu0 %v2416_v39  ;;  %2252 = vmatmul.mubr.bf16.gmra.mrb[28].mxu1 %v2417_v40 }
  0x97   : > { %2191 = vmatprep.mubr.bf16.mxu0 %v2418_v41  ;;  %2255 = vmatprep.mubr.bf16.mxu1 %v2419_v42 }
  0x9e   : > { %2192 = vmatmul.mubr.bf16.gmra.mrb[32].mxu0 %v2420_v43  ;;  %2256 = vmatmul.mubr.bf16.gmra.mrb[32].mxu1 %v2421_v44 }
  0x9f   : > { %2195 = vmatprep.mubr.bf16.mxu0 %v2422_v45  ;;  %2259 = vmatprep.mubr.bf16.mxu1 %v2423_v46 }
  0xa6   : > { %2196 = vmatmul.mubr.bf16.gmra.mrb[36].mxu0 %v2424_v47  ;;  %2260 = vmatmul.mubr.bf16.gmra.mrb[36].mxu1 %v2425_v48 }
  0xa7   : > { %2199 = vmatprep.mubr.bf16.mxu0 %v2426_v49  ;;  %2263 = vmatprep.mubr.bf16.mxu1 %v2427_v50 }
  0xae   : > { %2200 = vmatmul.mubr.bf16.gmra.mrb[40].mxu0 %v2428_v51  ;;  %2264 = vmatmul.mubr.bf16.gmra.mrb[40].mxu1 %v2429_v52 }
  0xaf   : > { %2203 = vmatprep.mubr.bf16.mxu0 %v2430_v53  ;;  %2267 = vmatprep.mubr.bf16.mxu1 %v2431_v54 }
  0xb6   : > { %2204 = vmatmul.mubr.bf16.gmra.mrb[44].mxu0 %v2432_v55  ;;  %2268 = vmatmul.mubr.bf16.gmra.mrb[44].mxu1 %v2433_v56 }
  0xb7   : > { %2207 = vmatprep.mubr.bf16.mxu0 %v2434_v57  ;;  %2271 = vmatprep.mubr.bf16.mxu1 %v2435_v58 }
  0xbe   : > { %2208 = vmatmul.mubr.bf16.gmra.mrb[48].mxu0 %v2436_v59  ;;  %2272 = vmatmul.mubr.bf16.gmra.mrb[48].mxu1 %v2437_v60 }
  0xbf   : > { %2211 = vmatprep.mubr.bf16.mxu0 %v2438_v61  ;;  %2275 = vmatprep.mubr.bf16.mxu1 %v2439_v62 }
  0xc6   : > { %2212 = vmatmul.mubr.bf16.gmra.mrb[52].mxu0 %v2440_v63  ;;  %2276 = vmatmul.mubr.bf16.gmra.mrb[52].mxu1 %v2441_v0 }
  0xc7   : > { %2215 = vmatprep.mubr.bf16.mxu0 %v2442_v1  ;;  %2279 = vmatprep.mubr.bf16.mxu1 %v2443_v2 }
  0xce   : > { %2216 = vmatmul.mubr.bf16.gmra.mrb[56].mxu0 %v2444_v3  ;;  %2280 = vmatmul.mubr.bf16.gmra.mrb[56].mxu1 %v2445_v4 }
  0xcf   : > { %2219 = vmatprep.mubr.bf16.mxu0 %v2446_v5  ;;  %2283 = vmatprep.mubr.bf16.mxu1 %v2447_v6 }
  0xd6   : > { %2220 = vmatmul.mubr.bf16.gmra.mrb[60].mxu0 %v2448_v7  ;;  %2284 = vmatmul.mubr.bf16.gmra.mrb[60].mxu1 %v2449_v8 }
 0x131   : > { %v2161_v10 = vpop.f32.mrb[0].mxu0  ;;  %v2225_v11 = vpop.f32.mrb[0].mxu1 }
 0x132   : > { %v1141_v12 = vadd.f32 %v2225_v11, %v2799_v9  ;;  %v876_v13 = vpop.f32.mrb[1].mxu0  ;;  %v1132_v14 = vpop.f32.mrb[1].mxu1  ;;  %v885_v15 = vadd.f32 %v2161_v10, %v2799_v9 }
 0x133   : > { %v877_v16 = vadd.f32 %v2799_v9, %v876_v13  ;;  %v1133_v17 = vadd.f32 %v2799_v9, %v1132_v14  ;;  %v2162_v18 = vpop.f32.mrb[2].mxu0  ;;  %v2226_v19 = vpop.f32.mrb[2].mxu1 }
 0x134   : > { %v1453_v20 = vmax.f32 %v1141_v12, 0.0  ;;  %v888_v21 = vadd.f32 %v2162_v18, %v2799_v9  ;;  %v1144_v22 = vadd.f32 %v2226_v19, %v2799_v9  ;;  %v879_v23 = vpop.f32.mrb[3].mxu0  ;;  %v1135_v24 = vpop.f32.mrb[3].mxu1  ;;  %v1389_v29 = vmax.f32 %v885_v15, 0.0 }
 0x135   : > { %v1387_v25 = vmax.f32 %v877_v16, 0.0  ;;  %v1451_v26 = vmax.f32 %v1133_v17, 0.0  ;;  %v880_v27 = vadd.f32 %v2799_v9, %v879_v23  ;;  %v1136_v28 = vadd.f32 %v2799_v9, %v1135_v24 }
 0x136   : > { %v1667_v33 = vsel %vm1515_vm1, %v1453_v20, 0.0  ;;  %v1390_v34 = vmax.f32 %v888_v21, 0.0  ;;  %v1454_v36 = vmax.f32 %v1144_v22, 0.0  ;;  %v1519_v45 = vsel %vm1515_vm1, %v1389_v29, 0.0 }
 0x137   : > { %v1664_v30 = vsel %vm1515_vm1, %v1451_v26, 0.0  ;;  %v1388_v31 = vmax.f32 %v880_v27, 0.0  ;;  %v1452_v32 = vmax.f32 %v1136_v28, 0.0  ;;  %v1516_v35 = vsel %vm1515_vm1, %v1387_v25, 0.0 }
 0x138   : > { %v1521_v51 = vsel %vm1515_vm1, %v1390_v34, 0.0  ;;  %v1669_v56 = vsel %vm1515_vm1, %v1454_v36, 0.0 }
 0x139   : > { %v1517_v37 = vsel %vm1515_vm1, %v1388_v31, 0.0  ;;  %v1665_v38 = vsel %vm1515_vm1, %v1452_v32, 0.0  ;;  %v2165_v39 = vpop.f32.mrb[4].mxu0  ;;  %v2229_v40 = vpop.f32.mrb[4].mxu1 }
 0x13a   : > { %v1518_v41 = vadd.f32 %v1517_v37, %v1516_v35  ;;  %v1666_v42 = vadd.f32 %v1665_v38, %v1664_v30  ;;  %v892_v43 = vpop.f32.mrb[5].mxu0  ;;  %v1148_v44 = vpop.f32.mrb[5].mxu1  ;;  %v1157_v46 = vadd.f32 %v2229_v40, %v2799_v9  ;;  %v901_v57 = vadd.f32 %v2165_v39, %v2799_v9 }
 0x13b   : > { %v893_v47 = vadd.f32 %v2799_v9, %v892_v43  ;;  %v1149_v48 = vadd.f32 %v2799_v9, %v1148_v44  ;;  %v2166_v49 = vpop.f32.mrb[6].mxu0  ;;  %v2230_v50 = vpop.f32.mrb[6].mxu1 }
 0x13c   : > { %v1520_v52 = vadd.f32 %v1519_v45, %v1518_v41  ;;  %v1668_v53 = vadd.f32 %v1667_v33, %v1666_v42  ;;  %v895_v54 = vpop.f32.mrb[7].mxu0  ;;  %v1151_v55 = vpop.f32.mrb[7].mxu1  ;;  %v904_v62 = vadd.f32 %v2166_v49, %v2799_v9  ;;  %v1457_v63 = vmax.f32 %v1157_v46, 0.0 }
 0x13d   : > { %v1391_v58 = vmax.f32 %v893_v47, 0.0  ;;  %v1455_v59 = vmax.f32 %v1149_v48, 0.0  ;;  %v1160_v2 = vadd.f32 %v2230_v50, %v2799_v9  ;;  %v896_v5 = vadd.f32 %v2799_v9, %v895_v54 }
 0x13e   : > { %v1522_v60 = vadd.f32 %v1521_v51, %v1520_v52  ;;  %v1670_v61 = vadd.f32 %v1669_v56, %v1668_v53  ;;  %v1152_v6 = vadd.f32 %v2799_v9, %v1151_v55  ;;  %v1393_v7 = vmax.f32 %v901_v57, 0.0 }
 0x13f   : > { %v1523_v0 = vsel %vm1515_vm1, %v1391_v58, 0.0  ;;  %v1671_v1 = vsel %vm1515_vm1, %v1455_v59, 0.0  ;;  %v1394_v11 = vmax.f32 %v904_v62, 0.0  ;;  %v1392_v12 = vmax.f32 %v896_v5, 0.0 }
 0x140   : > { %v1524_v3 = vadd.f32 %v1523_v0, %v1522_v60  ;;  %v1672_v4 = vadd.f32 %v1671_v1, %v1670_v61  ;;  %v1456_v13 = vmax.f32 %v1152_v6, 0.0  ;;  %v1458_v17 = vmax.f32 %v1160_v2, 0.0 }
 0x141   : > { %v2169_v8 = vpop.f32.mrb[8].mxu0  ;;  %v2233_v10 = vpop.f32.mrb[8].mxu1  ;;  %v1675_v22 = vsel %vm1515_vm1, %v1457_v63, 0.0  ;;  %v1525_v23 = vsel %vm1515_vm1, %v1392_v12, 0.0  ;;  %v1527_v32 = vsel %vm1515_vm1, %v1393_v7, 0.0  ;;  %v1529_v33 = vsel %vm1515_vm1, %v1394_v11, 0.0 }
 0x142   : > { %v1173_v14 = vadd.f32 %v2233_v10, %v2799_v9  ;;  %v908_v15 = vpop.f32.mrb[9].mxu0  ;;  %v1164_v16 = vpop.f32.mrb[9].mxu1  ;;  %v1673_v24 = vsel %vm1515_vm1, %v1456_v13, 0.0  ;;  %v917_v25 = vadd.f32 %v2169_v8, %v2799_v9  ;;  %v1526_v28 = vadd.f32 %v1525_v23, %v1524_v3 }
 0x143   : > { %v909_v18 = vadd.f32 %v2799_v9, %v908_v15  ;;  %v1165_v19 = vadd.f32 %v2799_v9, %v1164_v16  ;;  %v2170_v20 = vpop.f32.mrb[10].mxu0  ;;  %v2234_v21 = vpop.f32.mrb[10].mxu1  ;;  %v1674_v29 = vadd.f32 %v1673_v24, %v1672_v4  ;;  %v1677_v36 = vsel %vm1515_vm1, %v1458_v17, 0.0 }
 0x144   : > { %v911_v26 = vpop.f32.mrb[11].mxu0  ;;  %v1167_v27 = vpop.f32.mrb[11].mxu1  ;;  %v1461_v34 = vmax.f32 %v1173_v14, 0.0  ;;  %v920_v35 = vadd.f32 %v2170_v20, %v2799_v9  ;;  %v1528_v37 = vadd.f32 %v1527_v32, %v1526_v28  ;;  %v1176_v39 = vadd.f32 %v2234_v21, %v2799_v9 }
 0x145   : > { %v1395_v30 = vmax.f32 %v909_v18, 0.0  ;;  %v1459_v31 = vmax.f32 %v1165_v19, 0.0  ;;  %v1676_v38 = vadd.f32 %v1675_v22, %v1674_v29  ;;  %v912_v42 = vadd.f32 %v2799_v9, %v911_v26 }
 0x146   : > { %v1168_v43 = vadd.f32 %v2799_v9, %v1167_v27  ;;  %v1397_v44 = vmax.f32 %v917_v25, 0.0  ;;  %v1530_v45 = vadd.f32 %v1529_v33, %v1528_v37  ;;  %v1683_v49 = vsel %vm1515_vm1, %v1461_v34, 0.0 }
 0x147   : > { %v1531_v40 = vsel %vm1515_vm1, %v1395_v30, 0.0  ;;  %v1679_v41 = vsel %vm1515_vm1, %v1459_v31, 0.0  ;;  %v1678_v46 = vadd.f32 %v1677_v36, %v1676_v38  ;;  %v1398_v50 = vmax.f32 %v920_v35, 0.0 }
 0x148   : > { %v1396_v51 = vmax.f32 %v912_v42, 0.0  ;;  %v1460_v52 = vmax.f32 %v1168_v43, 0.0  ;;  %v1532_v55 = vadd.f32 %v1531_v40, %v1530_v45  ;;  %v1462_v57 = vmax.f32 %v1176_v39, 0.0 }
 0x149   : > { %v2173_v47 = vpop.f32.mrb[12].mxu0  ;;  %v2237_v48 = vpop.f32.mrb[12].mxu1  ;;  %v1680_v56 = vadd.f32 %v1679_v41, %v1678_v46  ;;  %v1535_v3 = vsel %vm1515_vm1, %v1397_v44, 0.0  ;;  %v1537_v6 = vsel %vm1515_vm1, %v1398_v50, 0.0 }
 0x14a   : > { %v924_v53 = vpop.f32.mrb[13].mxu0  ;;  %v1180_v54 = vpop.f32.mrb[13].mxu1  ;;  %v1189_v58 = vadd.f32 %v2237_v48, %v2799_v9  ;;  %v1533_v61 = vsel %vm1515_vm1, %v1396_v51, 0.0  ;;  %v1681_v62 = vsel %vm1515_vm1, %v1460_v52, 0.0  ;;  %v933_v7 = vadd.f32 %v2173_v47, %v2799_v9 }
 0x14b   : > { %v2174_v59 = vpop.f32.mrb[14].mxu0  ;;  %v2238_v60 = vpop.f32.mrb[14].mxu1  ;;  %v925_v63 = vadd.f32 %v2799_v9, %v924_v53  ;;  %v1181_v0 = vadd.f32 %v2799_v9, %v1180_v54  ;;  %v1534_v4 = vadd.f32 %v1533_v61, %v1532_v55  ;;  %v1682_v5 = vadd.f32 %v1681_v62, %v1680_v56 }
 0x14c   : > { %v927_v1 = vpop.f32.mrb[15].mxu0  ;;  %v1183_v2 = vpop.f32.mrb[15].mxu1  ;;  %v1685_v11 = vsel %vm1515_vm1, %v1462_v57, 0.0  ;;  %v1465_v14 = vmax.f32 %v1189_v58, 0.0  ;;  %v936_v17 = vadd.f32 %v2174_v59, %v2799_v9  ;;  %v1192_v18 = vadd.f32 %v2238_v60, %v2799_v9 }
 0x14d   : > { %v1399_v8 = vmax.f32 %v925_v63, 0.0  ;;  %v1463_v10 = vmax.f32 %v1181_v0, 0.0  ;;  %v1536_v12 = vadd.f32 %v1535_v3, %v1534_v4  ;;  %v1684_v13 = vadd.f32 %v1683_v49, %v1682_v5 }
 0x14e   : > { %v928_v21 = vadd.f32 %v2799_v9, %v927_v1  ;;  %v1184_v22 = vadd.f32 %v2799_v9, %v1183_v2  ;;  %v1401_v25 = vmax.f32 %v933_v7, 0.0  ;;  %v1691_v35 = vsel %vm1515_vm1, %v1465_v14, 0.0 }
 0x14f   : > { %v1539_v15 = vsel %vm1515_vm1, %v1399_v8, 0.0  ;;  %v1687_v16 = vsel %vm1515_vm1, %v1463_v10, 0.0  ;;  %v1538_v19 = vadd.f32 %v1537_v6, %v1536_v12  ;;  %v1686_v20 = vadd.f32 %v1685_v11, %v1684_v13 }
 0x150   : > { %v1400_v31 = vmax.f32 %v928_v21, 0.0  ;;  %v1464_v32 = vmax.f32 %v1184_v22, 0.0  ;;  %v1402_v36 = vmax.f32 %v936_v17, 0.0  ;;  %v1466_v41 = vmax.f32 %v1192_v18, 0.0 }
 0x151   : > { %v2177_v23 = vpop.f32.mrb[16].mxu0  ;;  %v2241_v24 = vpop.f32.mrb[16].mxu1  ;;  %v1540_v29 = vadd.f32 %v1539_v15, %v1538_v19  ;;  %v1688_v30 = vadd.f32 %v1687_v16, %v1686_v20  ;;  %v1543_v45 = vsel %vm1515_vm1, %v1401_v25, 0.0 }
 0x152   : > { %v1205_v26 = vadd.f32 %v2241_v24, %v2799_v9  ;;  %v940_v27 = vpop.f32.mrb[17].mxu0  ;;  %v1196_v28 = vpop.f32.mrb[17].mxu1  ;;  %v1541_v42 = vsel %vm1515_vm1, %v1400_v31, 0.0  ;;  %v1689_v43 = vsel %vm1515_vm1, %v1464_v32, 0.0  ;;  %v949_v44 = vadd.f32 %v2177_v23, %v2799_v9 }
 0x153   : > { %v2178_v33 = vpop.f32.mrb[18].mxu0  ;;  %v2242_v34 = vpop.f32.mrb[18].mxu1  ;;  %v941_v37 = vadd.f32 %v2799_v9, %v940_v27  ;;  %v1197_v38 = vadd.f32 %v2799_v9, %v1196_v28  ;;  %v1542_v46 = vadd.f32 %v1541_v42, %v1540_v29  ;;  %v1690_v47 = vadd.f32 %v1689_v43, %v1688_v30 }
 0x154   : > { %v943_v39 = vpop.f32.mrb[19].mxu0  ;;  %v1199_v40 = vpop.f32.mrb[19].mxu1  ;;  %v1469_v48 = vmax.f32 %v1205_v26, 0.0  ;;  %v952_v51 = vadd.f32 %v2178_v33, %v2799_v9  ;;  %v1208_v52 = vadd.f32 %v2242_v34, %v2799_v9  ;;  %v1545_v57 = vsel %vm1515_vm1, %v1402_v36, 0.0 }
 0x155   : > { %v1403_v49 = vmax.f32 %v941_v37, 0.0  ;;  %v1467_v50 = vmax.f32 %v1197_v38, 0.0  ;;  %v1544_v53 = vadd.f32 %v1543_v45, %v1542_v46  ;;  %v1692_v54 = vadd.f32 %v1691_v35, %v1690_v47 }
 0x156   : > { %v944_v55 = vadd.f32 %v2799_v9, %v943_v39  ;;  %v1200_v56 = vadd.f32 %v2799_v9, %v1199_v40  ;;  %v1693_v58 = vsel %vm1515_vm1, %v1466_v41, 0.0  ;;  %v1405_v59 = vmax.f32 %v949_v44, 0.0 }
 0x157   : > { %v1701_v60 = vsel %vm1515_vm1, %v1467_v50, 0.0  ;;  %v1546_v63 = vadd.f32 %v1545_v57, %v1544_v53  ;;  %v2874_v0 = vadd.f32 %v1693_v58, %v1692_v54  ;;  %v1704_v5 = vsel %vm1515_vm1, %v1469_v48, 0.0 }
 0x158   : > { %v1404_v1 = vmax.f32 %v944_v55, 0.0  ;;  %v1468_v2 = vmax.f32 %v1200_v56, 0.0  ;;  %v1406_v6 = vmax.f32 %v952_v51, 0.0  ;;  %v1553_v12 = vsel %vm1515_vm1, %v1403_v49, 0.0 }
 0x159   : > { %v2181_v61 = vpop.f32.mrb[20].mxu0  ;;  %v2245_v62 = vpop.f32.mrb[20].mxu1  ;;  %v1470_v13 = vmax.f32 %v1208_v52, 0.0  ;;  %v1556_v20 = vsel %vm1515_vm1, %v1405_v59, 0.0  ;;  %v1547_v24 = vrot.slane %v1546_v63, 4 }
 0x15a   : > { %v956_v3 = vpop.f32.mrb[21].mxu0  ;;  %v1212_v4 = vpop.f32.mrb[21].mxu1  ;;  %v1554_v14 = vsel %vm1515_vm1, %v1404_v1, 0.0  ;;  %v1702_v15 = vsel %vm1515_vm1, %v1468_v2, 0.0  ;;  %v1221_v21 = vadd.f32 %v2245_v62, %v2799_v9  ;;  %v965_v27 = vadd.f32 %v2181_v61, %v2799_v9 }
 0x15b   : > { %v957_v7 = vadd.f32 %v2799_v9, %v956_v3  ;;  %v1213_v8 = vadd.f32 %v2799_v9, %v1212_v4  ;;  %v2182_v10 = vpop.f32.mrb[22].mxu0  ;;  %v2246_v11 = vpop.f32.mrb[22].mxu1  ;;  %v1555_v18 = vadd.f32 %v1554_v14, %v1553_v12  ;;  %v1703_v19 = vadd.f32 %v1702_v15, %v1701_v60 }
 0x15c   : > { %v959_v16 = vpop.f32.mrb[23].mxu0  ;;  %v1215_v17 = vpop.f32.mrb[23].mxu1  ;;  %v1558_v28 = vsel %vm1515_vm1, %v1406_v6, 0.0  ;;  %v1706_v29 = vsel %vm1515_vm1, %v1470_v13, 0.0  ;;  %v968_v34 = vadd.f32 %v2182_v10, %v2799_v9  ;;  %v1224_v35 = vadd.f32 %v2246_v11, %v2799_v9 }
 0x15d   : > { %v1407_v22 = vmax.f32 %v957_v7, 0.0  ;;  %v1471_v23 = vmax.f32 %v1213_v8, 0.0  ;;  %v1557_v25 = vadd.f32 %v1556_v20, %v1555_v18  ;;  %v1705_v26 = vadd.f32 %v1704_v5, %v1703_v19 }
 0x15e   : > { %v1473_v38 = vmax.f32 %v1221_v21, 0.0  ;;  %v960_v39 = vadd.f32 %v2799_v9, %v959_v16  ;;  %v1216_v40 = vadd.f32 %v2799_v9, %v1215_v17  ;;  %v1548_v43 = vadd.f32 %v1547_v24, %v1546_v63 }
 0x15f   : > { %v1560_v30 = vsel %vm1515_vm1, %v1407_v22, 0.0  ;;  %v1708_v31 = vsel %vm1515_vm1, %v1471_v23, 0.0  ;;  %v1559_v32 = vadd.f32 %v1558_v28, %v1557_v25  ;;  %v1707_v33 = vadd.f32 %v1706_v29, %v1705_v26 }
 0x160   : > { %v1409_v44 = vmax.f32 %v965_v27, 0.0  ;;  %v1408_v49 = vmax.f32 %v960_v39, 0.0  ;;  %v1472_v50 = vmax.f32 %v1216_v40, 0.0  ;;  %v1410_v53 = vmax.f32 %v968_v34, 0.0 }
 0x161   : > { %v2185_v36 = vpop.f32.mrb[24].mxu0  ;;  %v2249_v37 = vpop.f32.mrb[24].mxu1  ;;  %v1561_v45 = vadd.f32 %v1560_v30, %v1559_v32  ;;  %v1709_v46 = vadd.f32 %v1708_v31, %v1707_v33  ;;  %v1474_v54 = vmax.f32 %v1224_v35, 0.0  ;;  %v1712_v56 = vsel %vm1515_vm1, %v1473_v38, 0.0 }
 0x162   : > { %v972_v41 = vpop.f32.mrb[25].mxu0  ;;  %v1228_v42 = vpop.f32.mrb[25].mxu1  ;;  %v1237_v55 = vadd.f32 %v2249_v37, %v2799_v9  ;;  %v1562_v57 = vsel %vm1515_vm1, %v1408_v49, 0.0  ;;  %v1710_v58 = vsel %vm1515_vm1, %v1472_v50, 0.0  ;;  %v981_v59 = vadd.f32 %v2185_v36, %v2799_v9 }
 0x163   : > { %v2186_v47 = vpop.f32.mrb[26].mxu0  ;;  %v2250_v48 = vpop.f32.mrb[26].mxu1  ;;  %v1549_v60 = vrot.slane %v1548_v43, 2  ;;  %v1564_v61 = vsel %vm1515_vm1, %v1409_v44, 0.0  ;;  %v1563_v62 = vadd.f32 %v1562_v57, %v1561_v45  ;;  %v1711_v63 = vadd.f32 %v1710_v58, %v1709_v46 }
 0x164   : > { %v975_v51 = vpop.f32.mrb[27].mxu0  ;;  %v1231_v52 = vpop.f32.mrb[27].mxu1  ;;  %v1477_v1 = vmax.f32 %v1237_v55, 0.0  ;;  %v973_v2 = vadd.f32 %v2799_v9, %v972_v41  ;;  %v1229_v3 = vadd.f32 %v2799_v9, %v1228_v42  ;;  %v984_v4 = vadd.f32 %v2186_v47, %v2799_v9 }
 0x165   : > { %v1566_v5 = vsel %vm1515_vm1, %v1410_v53, 0.0  ;;  %v1714_v6 = vsel %vm1515_vm1, %v1474_v54, 0.0  ;;  %v1565_v7 = vadd.f32 %v1564_v61, %v1563_v62  ;;  %v1713_v8 = vadd.f32 %v1712_v56, %v1711_v63 }
 0x166   : > { %v1413_v12 = vmax.f32 %v981_v59, 0.0  ;;  %v1411_v13 = vmax.f32 %v973_v2, 0.0  ;;  %v1475_v14 = vmax.f32 %v1229_v3, 0.0  ;;  %v1240_v15 = vadd.f32 %v2250_v48, %v2799_v9 }
 0x167   : > { %v1567_v18 = vadd.f32 %v1566_v5, %v1565_v7  ;;  %v1715_v19 = vadd.f32 %v1714_v6, %v1713_v8  ;;  %v976_v20 = vadd.f32 %v2799_v9, %v975_v51  ;;  %v1232_v21 = vadd.f32 %v2799_v9, %v1231_v52 }
 0x168   : > { %v1720_v24 = vsel %vm1515_vm1, %v1477_v1, 0.0  ;;  %v1568_v25 = vsel %vm1515_vm1, %v1411_v13, 0.0  ;;  %v1716_v26 = vsel %vm1515_vm1, %v1475_v14, 0.0  ;;  %v1414_v27 = vmax.f32 %v984_v4, 0.0 }
 0x169   : > { %v2189_v10 = vpop.f32.mrb[28].mxu0  ;;  %v2253_v11 = vpop.f32.mrb[28].mxu1  ;;  %v1569_v30 = vadd.f32 %v1568_v25, %v1567_v18  ;;  %v1717_v31 = vadd.f32 %v1716_v26, %v1715_v19  ;;  %v1412_v32 = vmax.f32 %v976_v20, 0.0  ;;  %v1476_v33 = vmax.f32 %v1232_v21, 0.0 }
 0x16a   : > { %v988_v16 = vpop.f32.mrb[29].mxu0  ;;  %v1244_v17 = vpop.f32.mrb[29].mxu1  ;;  %v1478_v34 = vmax.f32 %v1240_v15, 0.0  ;;  %v997_v35 = vadd.f32 %v2189_v10, %v2799_v9  ;;  %v1253_v40 = vadd.f32 %v2253_v11, %v2799_v9  ;;  %v2917_v42 = vadd.f32 %v1549_v60, %v1548_v43 }
 0x16b   : > { %v2190_v22 = vpop.f32.mrb[30].mxu0  ;;  %v2254_v23 = vpop.f32.mrb[30].mxu1  ;;  %v989_v36 = vadd.f32 %v2799_v9, %v988_v16  ;;  %v1245_v37 = vadd.f32 %v2799_v9, %v1244_v17  ;;  %v1570_v38 = vsel %vm1515_vm1, %v1412_v32, 0.0  ;;  %v1718_v39 = vsel %vm1515_vm1, %v1476_v33, 0.0 }
 0x16c   : > { %v991_v28 = vpop.f32.mrb[31].mxu0  ;;  %v1247_v29 = vpop.f32.mrb[31].mxu1  ;;  %v1000_v41 = vadd.f32 %v2190_v22, %v2799_v9  ;;  %v1572_v44 = vsel %vm1515_vm1, %v1413_v12, 0.0  ;;  %v1571_v45 = vadd.f32 %v1570_v38, %v1569_v30  ;;  %v1719_v46 = vadd.f32 %v1718_v39, %v1717_v31 }
 0x16d   : > { %v1574_v47 = vsel %vm1515_vm1, %v1414_v27, 0.0  ;;  %v1415_v48 = vmax.f32 %v989_v36, 0.0  ;;  %v1479_v49 = vmax.f32 %v1245_v37, 0.0  ;;  %v1256_v50 = vadd.f32 %v2254_v23, %v2799_v9 }
 0x16e   : > { %v1722_v53 = vsel %vm1515_vm1, %v1478_v34, 0.0  ;;  %v1573_v54 = vadd.f32 %v1572_v44, %v1571_v45  ;;  %v1721_v55 = vadd.f32 %v1720_v24, %v1719_v46  ;;  %v1417_v56 = vmax.f32 %v997_v35, 0.0 }
 0x16f   : > { %v1481_v58 = vmax.f32 %v1253_v40, 0.0  ;;  %v1576_v59 = vsel %vm1515_vm1, %v1415_v48, 0.0  ;;  %v1724_v60 = vsel %vm1515_vm1, %v1479_v49, 0.0  ;;  %v1418_v61 = vmax.f32 %v1000_v41, 0.0 }
 0x170   : > { %v1575_v1 = vadd.f32 %v1574_v47, %v1573_v54  ;;  %v1723_v2 = vadd.f32 %v1722_v53, %v1721_v55  ;;  %v992_v3 = vadd.f32 %v2799_v9, %v991_v28  ;;  %v1248_v4 = vadd.f32 %v2799_v9, %v1247_v29 }
 0x171   : > { %v2193_v51 = vpop.f32.mrb[32].mxu0  ;;  %v2257_v52 = vpop.f32.mrb[32].mxu1  ;;  %v1482_v7 = vmax.f32 %v1256_v50, 0.0  ;;  %v1728_v16 = vsel %vm1515_vm1, %v1481_v58, 0.0  ;;  %v1551_v23 = vrot.slane %v2917_v42, 1  ;;  %v1580_v24 = vsel %vm1515_vm1, %v1417_v56, 0.0 }
 0x172   : > { %v1004_v57 = vpop.f32.mrb[33].mxu0  ;;  %v1260_v43 = vpop.f32.mrb[33].mxu1  ;;  %v1269_v8 = vadd.f32 %v2257_v52, %v2799_v9  ;;  %v1577_v12 = vadd.f32 %v1576_v59, %v1575_v1  ;;  %v1725_v13 = vadd.f32 %v1724_v60, %v1723_v2  ;;  %v1416_v14 = vmax.f32 %v992_v3, 0.0 }
 0x173   : > { %v2194_v62 = vpop.f32.mrb[34].mxu0  ;;  %v2258_v63 = vpop.f32.mrb[34].mxu1  ;;  %v1005_v10 = vadd.f32 %v2799_v9, %v1004_v57  ;;  %v1261_v11 = vadd.f32 %v2799_v9, %v1260_v43  ;;  %v1480_v15 = vmax.f32 %v1248_v4, 0.0  ;;  %v1013_v17 = vadd.f32 %v2193_v51, %v2799_v9 }
 0x174   : > { %v1007_v5 = vpop.f32.mrb[35].mxu0  ;;  %v1263_v6 = vpop.f32.mrb[35].mxu1  ;;  %v1578_v19 = vsel %vm1515_vm1, %v1416_v14, 0.0  ;;  %v1016_v21 = vadd.f32 %v2194_v62, %v2799_v9  ;;  %v1272_v22 = vadd.f32 %v2258_v63, %v2799_v9  ;;  %v1582_v29 = vsel %vm1515_vm1, %v1418_v61, 0.0 }
 0x175   : > { %v1483_v18 = vmax.f32 %v1261_v11, 0.0  ;;  %v1726_v20 = vsel %vm1515_vm1, %v1480_v15, 0.0  ;;  %v1579_v25 = vadd.f32 %v1578_v19, %v1577_v12  ;;  %v1730_v30 = vsel %vm1515_vm1, %v1482_v7, 0.0 }
 0x176   : > { %v1727_v26 = vadd.f32 %v1726_v20, %v1725_v13  ;;  %v1485_v31 = vmax.f32 %v1269_v8, 0.0  ;;  %v1419_v32 = vmax.f32 %v1005_v10, 0.0  ;;  %v1008_v37 = vadd.f32 %v2799_v9, %v1007_v5 }
 0x177   : > { %v1581_v35 = vadd.f32 %v1580_v24, %v1579_v25  ;;  %v1264_v38 = vadd.f32 %v2799_v9, %v1263_v6  ;;  %v1421_v41 = vmax.f32 %v1013_v17, 0.0  ;;  %v1738_v44 = vsel %vm1515_vm1, %v1483_v18, 0.0 }
 0x178   : > { %v1729_v36 = vadd.f32 %v1728_v16, %v1727_v26  ;;  %v1422_v45 = vmax.f32 %v1016_v21, 0.0  ;;  %v1486_v46 = vmax.f32 %v1272_v22, 0.0  ;;  %v1420_v51 = vmax.f32 %v1008_v37, 0.0 }
 0x179   : > { %v2197_v27 = vpop.f32.mrb[36].mxu0  ;;  %v2261_v28 = vpop.f32.mrb[36].mxu1  ;;  %v1583_v49 = vadd.f32 %v1582_v29, %v1581_v35  ;;  %v1484_v52 = vmax.f32 %v1264_v38, 0.0  ;;  %v1741_v53 = vsel %vm1515_vm1, %v1485_v31, 0.0  ;;  %v1590_v54 = vsel %vm1515_vm1, %v1419_v32, 0.0 }
 0x17a   : > { %v1020_v33 = vpop.f32.mrb[37].mxu0  ;;  %v1276_v34 = vpop.f32.mrb[37].mxu1  ;;  %v2943_v50 = vadd.f32 %v1730_v30, %v1729_v36  ;;  %v1591_v43 = vsel %vm1515_vm1, %v1420_v51, 0.0  ;;  %v1285_v59 = vadd.f32 %v2261_v28, %v2799_v9  ;;  %v1593_v60 = vsel %vm1515_vm1, %v1421_v41, 0.0 }
 0x17b   : > { %v2198_v39 = vpop.f32.mrb[38].mxu0  ;;  %v2262_v40 = vpop.f32.mrb[38].mxu1  ;;  %v1021_v55 = vadd.f32 %v2799_v9, %v1020_v33  ;;  %v1277_v56 = vadd.f32 %v2799_v9, %v1276_v34  ;;  %v1584_v57 = vrot.slane %v1583_v49, 4  ;;  %v1739_v58 = vsel %vm1515_vm1, %v1484_v52, 0.0 }
 0x17c   : > { %v1023_v47 = vpop.f32.mrb[39].mxu0  ;;  %v1279_v48 = vpop.f32.mrb[39].mxu1  ;;  %v1595_v61 = vsel %vm1515_vm1, %v1422_v45, 0.0  ;;  %v1592_v62 = vadd.f32 %v1591_v43, %v1590_v54  ;;  %v1740_v63 = vadd.f32 %v1739_v58, %v1738_v44  ;;  %v1743_v2 = vsel %vm1515_vm1, %v1486_v46, 0.0 }
 0x17d   : > { %v1585_v1 = vadd.f32 %v1584_v57, %v1583_v49  ;;  %v1423_v3 = vmax.f32 %v1021_v55, 0.0  ;;  %v1487_v4 = vmax.f32 %v1277_v56, 0.0  ;;  %v1029_v10 = vadd.f32 %v2197_v27, %v2799_v9 }
 0x17e   : > { %v1594_v7 = vadd.f32 %v1593_v60, %v1592_v62  ;;  %v1742_v8 = vadd.f32 %v1741_v53, %v1740_v63  ;;  %v1032_v11 = vadd.f32 %v2198_v39, %v2799_v9  ;;  %v1489_v15 = vmax.f32 %v1285_v59, 0.0 }
 0x17f   : > { %v1586_v14 = vrot.slane %v1585_v1, 2  ;;  %v1597_v16 = vsel %vm1515_vm1, %v1423_v3, 0.0  ;;  %v1745_v17 = vsel %vm1515_vm1, %v1487_v4, 0.0  ;;  %v1288_v22 = vadd.f32 %v2262_v40, %v2799_v9 }
 0x180   : > { %v1596_v20 = vadd.f32 %v1595_v61, %v1594_v7  ;;  %v1744_v21 = vadd.f32 %v1743_v2, %v1742_v8  ;;  %v1552_v26 = vadd.f32 %v1551_v23, %v2917_v42  ;;  %v1024_v28 = vadd.f32 %v2799_v9, %v1023_v47 }
 0x181   : > { %v2201_v5 = vpop.f32.mrb[40].mxu0  ;;  %v2265_v6 = vpop.f32.mrb[40].mxu1  ;;  %v1587_v27 = vadd.f32 %v1586_v14, %v1585_v1  ;;  %v1280_v29 = vadd.f32 %v2799_v9, %v1279_v48  ;;  %v1425_v30 = vmax.f32 %v1029_v10, 0.0  ;;  %v1426_v33 = vmax.f32 %v1032_v11, 0.0 }
 0x182   : > { %v1036_v12 = vpop.f32.mrb[41].mxu0  ;;  %v1292_v13 = vpop.f32.mrb[41].mxu1  ;;  %v1598_v31 = vadd.f32 %v1597_v16, %v1596_v20  ;;  %v1746_v32 = vadd.f32 %v1745_v17, %v1744_v21  ;;  %v1749_v35 = vsel %vm1515_vm1, %v1489_v15, 0.0  ;;  %v1424_v36 = vmax.f32 %v1024_v28, 0.0 }
 0x183   : > { %v2202_v18 = vpop.f32.mrb[42].mxu0  ;;  %v2266_v19 = vpop.f32.mrb[42].mxu1  ;;  %v1588_v34 = vrot.slane %v1587_v27, 1  ;;  %v1488_v37 = vmax.f32 %v1280_v29, 0.0  ;;  %v1490_v38 = vmax.f32 %v1288_v22, 0.0  ;;  %v1045_v39 = vadd.f32 %v2201_v5, %v2799_v9 }
 0x184   : > { %v1039_v24 = vpop.f32.mrb[43].mxu0  ;;  %v1295_v25 = vpop.f32.mrb[43].mxu1  ;;  %v1037_v40 = vadd.f32 %v2799_v9, %v1036_v12  ;;  %v1293_v42 = vadd.f32 %v2799_v9, %v1292_v13  ;;  %v1599_v41 = vsel %vm1515_vm1, %v1424_v36, 0.0  ;;  %v1301_v45 = vadd.f32 %v2265_v6, %v2799_v9 }
 0x185   : > { %v1589_v23 = vadd.f32 %v1588_v34, %v1587_v27  ;;  %v1747_v44 = vsel %vm1515_vm1, %v1488_v37, 0.0  ;;  %v1601_v48 = vsel %vm1515_vm1, %v1425_v30, 0.0  ;;  %v1603_v49 = vsel %vm1515_vm1, %v1426_v33, 0.0 }
 0x186   : > { %v1600_v51 = vadd.f32 %v1599_v41, %v1598_v31  ;;  %v1748_v52 = vadd.f32 %v1747_v44, %v1746_v32  ;;  %v1427_v56 = vmax.f32 %v1037_v40, 0.0  ;;  %v1491_v57 = vmax.f32 %v1293_v42, 0.0 }
 0x187   : > { %v2975_v55 = vsel %vm1813_vm2, %v1552_v26, %v1589_v23  ;;  %v1048_v43 = vadd.f32 %v2202_v18, %v2799_v9  ;;  %v1751_v60 = vsel %vm1515_vm1, %v1490_v38, 0.0  ;;  %v1429_v63 = vmax.f32 %v1045_v39, 0.0 }
 0x188   : > { %v1602_v61 = vadd.f32 %v1601_v48, %v1600_v51  ;;  %v1750_v62 = vadd.f32 %v1749_v35, %v1748_v52  ;;  %v1493_v3 = vmax.f32 %v1301_v45, 0.0  ;;  %v1605_v4 = vsel %vm1515_vm1, %v1427_v56, 0.0 }
 0x189   : > { %v2205_v46 = vpop.f32.mrb[44].mxu0  ;;  %v2269_v47 = vpop.f32.mrb[44].mxu1  ;;  %v1753_v5 = vsel %vm1515_vm1, %v1491_v57, 0.0  ;;  %v1304_v6 = vadd.f32 %v2266_v19, %v2799_v9  ;;  %v1040_v10 = vadd.f32 %v2799_v9, %v1039_v24  ;;  %v1296_v11 = vadd.f32 %v2799_v9, %v1295_v25 }
 0x18a   : > { %v1052_v53 = vpop.f32.mrb[45].mxu0  ;;  %v1308_v54 = vpop.f32.mrb[45].mxu1  ;;  %v1604_v7 = vadd.f32 %v1603_v49, %v1602_v61  ;;  %v1752_v8 = vadd.f32 %v1751_v60, %v1750_v62  ;;  %v1430_v12 = vmax.f32 %v1048_v43, 0.0  ;;  %v1609_v18 = vsel %vm1515_vm1, %v1429_v63, 0.0 }
 0x18b   : > { %v2206_v58 = vpop.f32.mrb[46].mxu0  ;;  %v2270_v59 = vpop.f32.mrb[46].mxu1  ;;  %v1494_v13 = vmax.f32 %v1304_v6, 0.0  ;;  %v1428_v16 = vmax.f32 %v1040_v10, 0.0  ;;  %v1492_v17 = vmax.f32 %v1296_v11, 0.0  ;;  %v1757_v20 = vsel %vm1515_vm1, %v1493_v3, 0.0 }
 0x18c   : > { %v1055_v1 = vpop.f32.mrb[47].mxu0  ;;  %v1311_v2 = vpop.f32.mrb[47].mxu1  ;;  %v1606_v14 = vadd.f32 %v1605_v4, %v1604_v7  ;;  %v1754_v15 = vadd.f32 %v1753_v5, %v1752_v8  ;;  %v1053_v21 = vadd.f32 %v2799_v9, %v1052_v53  ;;  %v1317_v25 = vadd.f32 %v2269_v47, %v2799_v9 }
 0x18d   : > { %v1607_v26 = vsel %vm1515_vm1, %v1428_v16, 0.0  ;;  %v1755_v24 = vsel %vm1515_vm1, %v1492_v17, 0.0  ;;  %v1309_v27 = vadd.f32 %v2799_v9, %v1308_v54  ;;  %v1611_v30 = vsel %vm1515_vm1, %v1430_v12, 0.0 }
 0x18e   : > { %v1608_v31 = vadd.f32 %v1607_v26, %v1606_v14  ;;  %v1756_v32 = vadd.f32 %v1755_v24, %v1754_v15  ;;  %v1061_v33 = vadd.f32 %v2205_v46, %v2799_v9  ;;  %v1759_v36 = vsel %vm1515_vm1, %v1494_v13, 0.0 }
 0x18f   : > { %v1431_v37 = vmax.f32 %v1053_v21, 0.0  ;;  %v1495_v38 = vmax.f32 %v1309_v27, 0.0  ;;  %v1064_v39 = vadd.f32 %v2206_v58, %v2799_v9  ;;  %v1056_v44 = vadd.f32 %v2799_v9, %v1055_v1  ;;  %v3015_v27 = vld [vmem:[%s3148_s2] ss:$0 sm:$0xff] }
 0x190   : > { %v1610_v23 = vadd.f32 %v1609_v18, %v1608_v31  ;;  %v1758_v41 = vadd.f32 %v1757_v20, %v1756_v32  ;;  %v1312_v45 = vadd.f32 %v2799_v9, %v1311_v2  ;;  %v1497_v47 = vmax.f32 %v1317_v25, 0.0 }
 0x191   : > { %v2209_v22 = vpop.f32.mrb[48].mxu0  ;;  %v2273_v19 = vpop.f32.mrb[48].mxu1  ;;  %v1613_v48 = vsel %vm1515_vm1, %v1431_v37, 0.0  ;;  %v1761_v46 = vsel %vm1515_vm1, %v1495_v38, 0.0  ;;  %v1320_v49 = vadd.f32 %v2270_v59, %v2799_v9  ;;  %v1432_v53 = vmax.f32 %v1056_v44, 0.0 }
 0x192   : > { %v1068_v28 = vpop.f32.mrb[49].mxu0  ;;  %v1324_v29 = vpop.f32.mrb[49].mxu1  ;;  %v1612_v51 = vadd.f32 %v1611_v30, %v1610_v23  ;;  %v1760_v52 = vadd.f32 %v1759_v36, %v1758_v41  ;;  %v1496_v54 = vmax.f32 %v1312_v45, 0.0  ;;  %v1433_v56 = vmax.f32 %v1061_v33, 0.0 }
 0x193   : > { %v2210_v34 = vpop.f32.mrb[50].mxu0  ;;  %v2274_v35 = vpop.f32.mrb[50].mxu1  ;;  %v1434_v57 = vmax.f32 %v1064_v39, 0.0  ;;  %v1333_v43 = vadd.f32 %v2273_v19, %v2799_v9  ;;  %v1069_v58 = vadd.f32 %v2799_v9, %v1068_v28  ;;  %v1615_v62 = vsel %vm1515_vm1, %v1432_v53, 0.0 }
 0x194   : > { %v1071_v40 = vpop.f32.mrb[51].mxu0  ;;  %v1327_v42 = vpop.f32.mrb[51].mxu1  ;;  %v1614_v60 = vadd.f32 %v1613_v48, %v1612_v51  ;;  %v1762_v61 = vadd.f32 %v1761_v46, %v1760_v52  ;;  %v1763_v63 = vsel %vm1515_vm1, %v1496_v54, 0.0  ;;  %v1765_v59 = vsel %vm1515_vm1, %v1497_v47, 0.0 }
 0x195   : > { %v1498_v3 = vmax.f32 %v1320_v49, 0.0  ;;  %v1077_v4 = vadd.f32 %v2209_v22, %v2799_v9  ;;  %v1325_v5 = vadd.f32 %v2799_v9, %v1324_v29  ;;  %v1501_v11 = vmax.f32 %v1333_v43, 0.0 }
 0x196   : > { %v1616_v8 = vadd.f32 %v1615_v62, %v1614_v60  ;;  %v1764_v10 = vadd.f32 %v1763_v63, %v1762_v61  ;;  %v1080_v12 = vadd.f32 %v2210_v34, %v2799_v9  ;;  %v1617_v15 = vsel %vm1515_vm1, %v1433_v56, 0.0 }
 0x197   : > { %v1499_v16 = vmax.f32 %v1325_v5, 0.0  ;;  %v1336_v17 = vadd.f32 %v2274_v35, %v2799_v9  ;;  %v1619_v21 = vsel %vm1515_vm1, %v1434_v57, 0.0  ;;  %v1435_v26 = vmax.f32 %v1069_v58, 0.0 }
 0x198   : > { %v1618_v22 = vadd.f32 %v1617_v15, %v1616_v8  ;;  %v1766_v19 = vadd.f32 %v1765_v59, %v1764_v10  ;;  %v1767_v24 = vsel %vm1515_vm1, %v1498_v3, 0.0  ;;  %v1437_v25 = vmax.f32 %v1077_v4, 0.0 }
 0x199   : > { %v2213_v1 = vpop.f32.mrb[52].mxu0  ;;  %v2277_v2 = vpop.f32.mrb[52].mxu1  ;;  %v1072_v28 = vadd.f32 %v3015_v27, %v1071_v40  ;;  %v1328_v29 = vadd.f32 %v3015_v27, %v1327_v42  ;;  %v1778_v31 = vsel %vm1515_vm1, %v1501_v11, 0.0  ;;  %v1438_v32 = vmax.f32 %v1080_v12, 0.0 }
 0x19a   : > { %v1084_v6 = vpop.f32.mrb[53].mxu0  ;;  %v1340_v7 = vpop.f32.mrb[53].mxu1  ;;  %v1620_v9 = vadd.f32 %v1619_v21, %v1618_v22  ;;  %v3019_v30 = vadd.f32 %v1767_v24, %v1766_v19  ;;  %v1775_v33 = vsel %vm1515_vm1, %v1499_v16, 0.0  ;;  %v1502_v34 = vmax.f32 %v1336_v17, 0.0 }
 0x19b   : > { %v2214_v13 = vpop.f32.mrb[54].mxu0  ;;  %v2278_v14 = vpop.f32.mrb[54].mxu1  ;;  %v1436_v35 = vmax.f32 %v1072_v28, 0.0  ;;  %v1500_v36 = vmax.f32 %v1328_v29, 0.0  ;;  %v1627_v38 = vsel %vm1515_vm1, %v1435_v26, 0.0  ;;  %v1085_v39 = vadd.f32 %v3015_v27, %v1084_v6 }
 0x19c   : > { %v1087_v18 = vpop.f32.mrb[55].mxu0  ;;  %v1343_v20 = vpop.f32.mrb[55].mxu1  ;;  %v1621_v37 = vrot.slane %v1620_v9, 4  ;;  %v1341_v40 = vadd.f32 %v3015_v27, %v1340_v7  ;;  %v1093_v45 = vadd.f32 %v3015_v27, %v2213_v1  ;;  %v1349_v47 = vadd.f32 %v3015_v27, %v2277_v2 }
 0x19d   : > { %v1628_v41 = vsel %vm1515_vm1, %v1436_v35, 0.0  ;;  %v1776_v44 = vsel %vm1515_vm1, %v1500_v36, 0.0  ;;  %v1630_v51 = vsel %vm1515_vm1, %v1437_v25, 0.0  ;;  %v1632_v57 = vsel %vm1515_vm1, %v1438_v32, 0.0 }
 0x19e   : > { %v1622_v49 = vadd.f32 %v1621_v37, %v1620_v9  ;;  %v1629_v52 = vadd.f32 %v1628_v41, %v1627_v38  ;;  %v1777_v53 = vadd.f32 %v1776_v44, %v1775_v33  ;;  %v1780_v43 = vsel %vm1515_vm1, %v1502_v34, 0.0 }
 0x19f   : > { %v1439_v58 = vmax.f32 %v1085_v39, 0.0  ;;  %v1503_v60 = vmax.f32 %v1341_v40, 0.0  ;;  %v1096_v59 = vadd.f32 %v3015_v27, %v2214_v13  ;;  %v1441_v3 = vmax.f32 %v1093_v45, 0.0 }
 0x1a0   : > { %v1623_v63 = vrot.slane %v1622_v49, 2  ;;  %v1631_v1 = vadd.f32 %v1630_v51, %v1629_v52  ;;  %v1779_v2 = vadd.f32 %v1778_v31, %v1777_v53  ;;  %v1505_v4 = vmax.f32 %v1349_v47, 0.0 }
 0x1a1   : > { %v2217_v23 = vpop.f32.mrb[56].mxu0  ;;  %v2281_v42 = vpop.f32.mrb[56].mxu1  ;;  %v1634_v5 = vsel %vm1515_vm1, %v1439_v58, 0.0  ;;  %v1782_v6 = vsel %vm1515_vm1, %v1503_v60, 0.0  ;;  %v1352_v11 = vadd.f32 %v3015_v27, %v2278_v14  ;;  %v1088_v12 = vadd.f32 %v3015_v27, %v1087_v18 }
 0x1a2   : > { %v1100_v48 = vpop.f32.mrb[57].mxu0  ;;  %v1356_v46 = vpop.f32.mrb[57].mxu1  ;;  %v1624_v7 = vadd.f32 %v1623_v63, %v1622_v49  ;;  %v1633_v8 = vadd.f32 %v1632_v57, %v1631_v1  ;;  %v1781_v10 = vadd.f32 %v1780_v43, %v1779_v2  ;;  %v1344_v15 = vadd.f32 %v3015_v27, %v1343_v20 }
 0x1a3   : > { %v2218_v54 = vpop.f32.mrb[58].mxu0  ;;  %v2282_v56 = vpop.f32.mrb[58].mxu1  ;;  %v1442_v22 = vmax.f32 %v1096_v59, 0.0  ;;  %v1638_v26 = vsel %vm1515_vm1, %v1441_v3, 0.0  ;;  %v1440_v24 = vmax.f32 %v1088_v12, 0.0  ;;  %v1786_v14 = vsel %vm1515_vm1, %v1505_v4, 0.0 }
 0x1a4   : > { %v1103_v61 = vpop.f32.mrb[59].mxu0  ;;  %v1359_v62 = vpop.f32.mrb[59].mxu1  ;;  %v1625_v16 = vrot.slane %v1624_v7, 1  ;;  %v1635_v17 = vadd.f32 %v1634_v5, %v1633_v8  ;;  %v1783_v21 = vadd.f32 %v1782_v6, %v1781_v10  ;;  %v1504_v25 = vmax.f32 %v1344_v15, 0.0 }
 0x1a5   : > { %v1506_v31 = vmax.f32 %v1352_v11, 0.0  ;;  %v1101_v18 = vadd.f32 %v3015_v27, %v1100_v48  ;;  %v1636_v33 = vsel %vm1515_vm1, %v1440_v24, 0.0  ;;  %v1365_v35 = vadd.f32 %v3015_v27, %v2281_v42 }
 0x1a6   : > { %v1626_v9 = vadd.f32 %v1625_v16, %v1624_v7  ;;  %v1784_v34 = vsel %vm1515_vm1, %v1504_v25, 0.0  ;;  %v1357_v36 = vadd.f32 %v3015_v27, %v1356_v46  ;;  %v1640_v40 = vsel %vm1515_vm1, %v1442_v22, 0.0 }
 0x1a7   : > { %v1637_v41 = vadd.f32 %v1636_v33, %v1635_v17  ;;  %v1785_v44 = vadd.f32 %v1784_v34, %v1783_v21  ;;  %v1109_v45 = vadd.f32 %v3015_v27, %v2217_v23  ;;  %v1443_v47 = vmax.f32 %v1101_v18, 0.0 }
 0x1a8   : > { %v3048_v39 = vsel %vm1815_vm3, %v2975_v55, %v1626_v9  ;;  %v1507_v48 = vmax.f32 %v1357_v36, 0.0  ;;  %v1112_v49 = vadd.f32 %v3015_v27, %v2218_v54  ;;  %v1788_v42 = vsel %vm1515_vm1, %v1506_v31, 0.0 }
 0x1a9   : > { %v2221_v13 = vpop.f32.mrb[60].mxu0  ;;  %v2285_v19 = vpop.f32.mrb[60].mxu1  ;;  %v1639_v51 = vadd.f32 %v1638_v26, %v1637_v41  ;;  %v1787_v46 = vadd.f32 %v1786_v14, %v1785_v44  ;;  %v1368_v52 = vadd.f32 %v3015_v27, %v2282_v56  ;;  %v1509_v53 = vmax.f32 %v1365_v35, 0.0 }
 0x1aa   : > { %v1116_v28 = vpop.f32.mrb[61].mxu0  ;;  %v1372_v29 = vpop.f32.mrb[61].mxu1  ;;  %v1642_v55 = vsel %vm1515_vm1, %v1443_v47, 0.0  ;;  %v1790_v57 = vsel %vm1515_vm1, %v1507_v48, 0.0  ;;  %v1104_v43 = vadd.f32 %v3015_v27, %v1103_v61  ;;  %v1360_v23 = vadd.f32 %v3015_v27, %v1359_v62 }
 0x1ab   : > { %v2222_v20 = vpop.f32.mrb[62].mxu0  ;;  %v2286_v32 = vpop.f32.mrb[62].mxu1  ;;  %v1641_v58 = vadd.f32 %v1640_v40, %v1639_v51  ;;  %v1789_v60 = vadd.f32 %v1788_v42, %v1787_v46  ;;  %v1445_v63 = vmax.f32 %v1109_v45, 0.0  ;;  %v1446_v1 = vmax.f32 %v1112_v49, 0.0 }
 0x1ac   : > { %v1119_v37 = vpop.f32.mrb[63].mxu0  ;;  %v1375_v38 = vpop.f32.mrb[63].mxu1  ;;  %v1444_v54 = vmax.f32 %v1104_v43, 0.0  ;;  %v1510_v3 = vmax.f32 %v1368_v52, 0.0  ;;  %v1508_v4 = vmax.f32 %v1360_v23, 0.0  ;;  %v1794_v56 = vsel %vm1515_vm1, %v1509_v53, 0.0 }
 0x1ad   : > { %v1643_v2 = vadd.f32 %v1642_v55, %v1641_v58  ;;  %v1791_v59 = vadd.f32 %v1790_v57, %v1789_v60  ;;  %v1125_v6 = vadd.f32 %v3015_v27, %v2221_v13  ;;  %v1117_v7 = vadd.f32 %v3015_v27, %v1116_v28 }
 0x1ae   : > { %v1644_v5 = vsel %vm1515_vm1, %v1444_v54, 0.0  ;;  %v1792_v8 = vsel %vm1515_vm1, %v1508_v4, 0.0  ;;  %v1381_v62 = vadd.f32 %v3015_v27, %v2285_v19  ;;  %v1373_v10 = vadd.f32 %v3015_v27, %v1372_v29 }
 0x1af   : > { %v1645_v61 = vadd.f32 %v1644_v5, %v1643_v2  ;;  %v1695_v11 = vrot.slane %v2874_v0, 4  ;;  %v1646_v12 = vsel %vm1515_vm1, %v1445_v63, 0.0  ;;  %v1793_v15 = vadd.f32 %v1792_v8, %v1791_v59 }
 0x1b0   : > { %v1447_v16 = vmax.f32 %v1117_v7, 0.0  ;;  %v1648_v17 = vsel %vm1515_vm1, %v1446_v1, 0.0  ;;  %v1796_v21 = vsel %vm1515_vm1, %v1510_v3, 0.0  ;;  %v1511_v13 = vmax.f32 %v1373_v10, 0.0 }
 0x1b1   : > { %v1647_v22 = vadd.f32 %v1646_v12, %v1645_v61  ;;  %v1795_v26 = vadd.f32 %v1794_v56, %v1793_v15  ;;  %v1128_v25 = vadd.f32 %v3015_v27, %v2222_v20  ;;  %v1120_v19 = vadd.f32 %v3015_v27, %v1119_v37 }
 0x1b2   : > { %v1650_v24 = vsel %vm1515_vm1, %v1447_v16, 0.0  ;;  %v1449_v28 = vmax.f32 %v1125_v6, 0.0  ;;  %v1513_v29 = vmax.f32 %v1381_v62, 0.0  ;;  %v1798_v14 = vsel %vm1515_vm1, %v1511_v13, 0.0 }
 0x1b3   : > { %v1649_v9 = vadd.f32 %v1648_v17, %v1647_v22  ;;  %v1797_v31 = vadd.f32 %v1796_v21, %v1795_v26  ;;  %v1384_v18 = vadd.f32 %v3015_v27, %v2286_v32  ;;  %v1448_v33 = vmax.f32 %v1120_v19, 0.0  ;;  %v1812_v21 = vld [vmem:[#allocation2] sm:$0xff]  ;;  %v2452_v19 = vld [vmem:[%s3149_s3 + $0x8] sm:$0xff] (!%p2058_p7)  }
 0x1b4   : > { %v1376_v34 = vadd.f32 %v3015_v27, %v1375_v38  ;;  %v1732_v35 = vrot.slane %v2943_v50, 4  ;;  %v1769_v36 = vrot.slane %v3019_v30, 4  ;;  %v1450_v20 = vmax.f32 %v1128_v25, 0.0  ;;  %v2451_v25 = vld [vmem:[%s3149_s3] sm:$0xff] (!%p2058_p7)  }
 0x1b5   : > { %v1651_v40 = vadd.f32 %v1650_v24, %v1649_v9  ;;  %v1799_v41 = vadd.f32 %v1798_v14, %v1797_v31  ;;  %v1652_v37 = vsel %vm1515_vm1, %v1448_v33, 0.0  ;;  %v1696_v45 = vadd.f32 %v1695_v11, %v2874_v0  ;;  %v2059_v14 = vld [vmem:[%s3150_s4] ss:$0 sm:$0xff] (!%p2058_p7) }
 0x1b6   : > { %v1512_v44 = vmax.f32 %v1376_v34, 0.0  ;;  %v1654_v48 = vsel %vm1515_vm1, %v1449_v28, 0.0  ;;  %v1802_v32 = vsel %vm1515_vm1, %v1513_v29, 0.0  ;;  %v1514_v49 = vmax.f32 %v1384_v18, 0.0 }
 0x1b7   : > { %v1653_v47 = vadd.f32 %v1652_v37, %v1651_v40  ;;  %v1733_v38 = vadd.f32 %v1732_v35, %v2943_v50  ;;  %v1770_v46 = vadd.f32 %v1769_v36, %v3019_v30  ;;  %v1656_v52 = vsel %vm1515_vm1, %v1450_v20, 0.0 }
 0x1b8   : > { %v1800_v27 = vsel %vm1515_vm1, %v1512_v44, 0.0  ;;  %v1697_v57 = vrot.slane %v1696_v45, 2  ;;  %v1804_v0 = vsel %vm1515_vm1, %v1514_v49, 0.0 }
 0x1b9   : > { %v1655_v42 = vadd.f32 %v1654_v48, %v1653_v47  ;;  %v1801_v51 = vadd.f32 %v1800_v27, %v1799_v41  ;;  %v1734_v43 = vrot.slane %v1733_v38, 2  ;;  %v1771_v23 = vrot.slane %v1770_v46, 2 }
 0x1ba   : > { %v1698_v54 = vadd.f32 %v1697_v57, %v1696_v45 }
 0x1bb   : > { %v1657_v53 = vadd.f32 %v1656_v52, %v1655_v42  ;;  %v1803_v55 = vadd.f32 %v1802_v32, %v1801_v51  ;;  %v1735_v2 = vadd.f32 %v1734_v43, %v1733_v38  ;;  %v1772_v3 = vadd.f32 %v1771_v23, %v1770_v46 }
 0x1bc   : > { %v1699_v56 = vrot.slane %v1698_v54, 1 }
 0x1bd   : > { %v1658_v58 = vrot.slane %v1657_v53, 4  ;;  %v1805_v60 = vadd.f32 %v1804_v0, %v1803_v55  ;;  %v1736_v5 = vrot.slane %v1735_v2, 1  ;;  %v1773_v61 = vrot.slane %v1772_v3, 1 }
 0x1be   : > { %v1700_v10 = vadd.f32 %v1699_v56, %v1698_v54 }
 0x1bf   : > { %v1659_v63 = vadd.f32 %v1658_v58, %v1657_v53  ;;  %v1806_v1 = vrot.slane %v1805_v60, 4  ;;  %v1737_v11 = vadd.f32 %v1736_v5, %v1735_v2  ;;  %v1774_v15 = vadd.f32 %v1773_v61, %v1772_v3 }
 0x1c1   : > { %v1660_v50 = vrot.slane %v1659_v63, 2  ;;  %v1807_v59 = vadd.f32 %v1806_v1, %v1805_v60 }
 0x1c3   : > { %v1661_v4 = vadd.f32 %v1660_v50, %v1659_v63  ;;  %v1808_v30 = vrot.slane %v1807_v59, 2 }
 0x1c5   : > { %v1662_v6 = vrot.slane %v1661_v4, 1  ;;  %v1809_v7 = vadd.f32 %v1808_v30, %v1807_v59 }
 0x1c7   : > { %v1663_v8 = vadd.f32 %v1662_v6, %v1661_v4  ;;  %v1810_v62 = vrot.slane %v1809_v7, 1 }
 0x1c9   : > { %v1818_v12 = vsel %vm1817_vm4, %v3048_v39, %v1663_v8  ;;  %v1811_v17 = vadd.f32 %v1810_v62, %v1809_v7  ;;  %v2569_v39 = vmov (!%p2058_p7), 0.0  }
 0x1ca   : > { %v1820_v16 = vsel %vm1819_vm5, %v1818_v12, %v1700_v10  ;;  %1832 = sbr.rel (%p2058_p7) target bundleno = 691 (0x2b3), region = 52  ;;  %2287 = vmatprep.subr.bf16.mxu0 (!%p2058_p7), %v2569_v39  ;;  %2291 = vmatprep.mubr.msk.bf16.mxu0 (!%p2058_p7), %vm2570_vm9, %v2569_v39 }
 0x1cb   : > { %v1822_v22 = vsel %vm1821_vm6, %v1820_v16, %v1737_v11  ;;  %2288 = vmatpush3.bf16.msra.mxu0 (!%p2058_p7), %v2451_v25 }
 0x1cc   : > { %v1824_v13 = vsel %vm1823_vm7, %v1822_v22, %v1774_v15  ;;  %2289 = vmatprep.subr.bf16.mxu0 (!%p2058_p7), %v2569_v39 }
 0x1cd   : > { %v1826_v26 = vsel %vm1825_vm8, %v1824_v13, %v1811_v17 }
 0x1ce   : > { %v1827_v24 = vadd.f32 %v1826_v26, %v1812_v21 }
 0x1cf   : > { %2290 = vmatpush3.bf16.msra.mxu0 (!%p2058_p7), %v2452_v19 }
 0x1d0   : > { %1828 = vst.msk [vmem:[#allocation2] sm:$0xff] %vm1515_vm1, %v1827_v24 }
 0x1d7   : > { %v1833_v28 = vld [vmem:[#allocation2] sm:$0xff] }
 0x1d8   : > { %v1834_v29 = vmul.f32 0.00390625, %v1833_v28 }
 0x1da   : > { %v1835_v9 = vpack.c.bf16 %v1834_v29, %v1834_v29 }
 0x1dc   : > { %2292 = vmatmul.mubr.msk.bf16.vlgmr.msra.gmra.mrb[0].mxu0 %vm1515_vm1, %v1835_v9 }
 0x2af   : > { %v1896_v31 = vpop.f32.mrb[0].mxu0 }
 0x2b0   : > { %v1897_v18 = vadd.f32 %v2059_v14, %v1896_v31  ;;  %v2293_v33 = vpop.f32.mrb[1].mxu0 }
 0x2b1   : > { %v1899_v34 = vpop.f32.mrb[2].mxu0 }
 0x2b2   : > { %1902 = vst [vmem:[#allocation6] sm:$0xff] %v1897_v18  ;;  %v2294_v35 = vpop.f32.mrb[3].mxu0 }
 0x2b3 PF: > { %p3102_p9 = scmp.eq.s32.totalorder %s1976_s24, 1  ;;  %s2571_s8 = smov [#allocation6]  }
 0x2b4   : > { %s1912_s9 = sshll.u32 %s2571_s8, 4  ;;  %s1913_s9 = int_to_ptr.vmem [resolvable:$true] %s1912_s9 }
 0x2b5   : > { %s2483_s10 = scalar_lea.vmem %s1913_s9, 128  ;;  %p2490_p10 = scmp.lt.s32.totalorder %s1913_s9, %s1913_s9 }
 0x2b6   : > { %p2484_p5 = scmp.ne.s32.totalorder %s1913_s9, %s2483_s10  ;;  %p2491_p12 = scmp.lt.s32.totalorder %s2483_s10, %s2483_s10 }
 0x2b8   : > { %p2485_p6 = pnand %p2484_p5, %p3102_p9  ;;  %p2492_p0 = por %p2491_p12, %p2490_p10 }
 0x2ba   : > { %p2486_p8 = pneg %p2485_p6 }
 0x2bc   : > { %p2493_p1 = pnand %p2492_p0, %p2486_p8 }
 0x2be   : > { %2496 = shalt.err (!%p2493_p1)
}
 0x2bf   : > { %s2497_s24 = scalar_lea.hbm %s3151_s5, 128 }
 0x2c0   : > { %p2498_p2 = scmp.ne.s32.totalorder %s3151_s5, %s2497_s24  ;;  %p2503_p3 = scmp.lt.u32.totalorder %s2497_s24, %s3151_s5 }
 0x2c2   : > { %p2499_p11 = pnand %p2498_p2, %p3102_p9 }
 0x2c4   : > { %p2500_p13 = pneg %p2499_p11 }
 0x2c6   : > { %p2505_p4 = pnand %p2503_p3, %p2500_p13 }
 0x2c8   : > { %2508 = shalt.err (!%p2505_p4)
}
 0x2c9   : > { %2314 = dma.vmem_to_hbm [thread:$0]  (%p3102_p9), %s1913_s9, 128, %s3151_s5, [#allocation5]  }
 0x2ca   : > { %2538 = dma.done.wait (%p3102_p9), [#allocation5], 128  }
 0x2cb   : > { %2540 = vsyncadd (%p3102_p9), [#allocation5], 4294967168 }
 0x2cc PF: > { %s19_s23 = sadd.s32 1, %s2563_s23   ;;  %s3156_s18 = smov %s2547_s19 }
 0x2cd   : > { %p16_p7 = scmp.ge.s32.totalorder %s19_s23, 4   ;;  %s3157_s19 = smov %s2551_s20 }
 0x2ce   : > { %s3158_s20 = smov %s2653_s30  ;;  %s3159_s21 = smov %s2559_s22 }
 0x2cf   : > { %s3160_s22 = smov %s3162_s25  ;;  %18 = sbr.rel (!%p16_p7) target bundleno = 5 (0x5), region = 86 }
 0x2d6   :  { %1925 = vsyncpa [#allocation4], 1 }
 0x2d7   :  { %1927 = vsyncpa [#allocation4 + $0x1], 1 }
 0x2d8   :  { %1928 = vsyncpa [#allocation5], 1 }
 0x2d9   :  { %1930 = vsyncpa [#allocation5 + $0x1], 1 }

</bundles_post_ra>
